<compile_context>
chip_gen: v7x
topology: tpu7x:2x2x1
jax: 0.10.0
libtpu: 0.0.40
codegen_flags: <defaults>
</compile_context>

<pallas_src>
import jax
import jax.numpy as jnp
from jax import lax
from jax.experimental import pallas as pl
from jax.experimental.pallas import tpu as pltpu


def _round_up(x, m):
    return ((x + m - 1) // m) * m


def _num_tensorcores():
    """2 TensorCores per Pallas device on v7x (megacore-style grid sharding); 1 on v5e/v6e."""
    try:
        kind = jax.devices()[0].device_kind.lower()
        if "v7" in kind:
            return 2
    except Exception:
        pass
    return 1


def _vmem_budget_bytes():
    """~85% of physical per-core VMEM (headroom for Mosaic internal scratch)."""
    cap = None
    try:
        cap = getattr(pltpu.get_tpu_info(), "vmem_capacity_bytes", None)
    except Exception:
        cap = None
    if not cap:
        cap = 64 * 1024 * 1024           # conservative (v7x); v5e/v6e have 128 MiB
    return int(0.85 * int(cap))


def _sigmoid_via_tanh(x):
    # sigmoid(x) == 0.5 * tanh(0.5 * x) + 0.5 : a single EUP transcendental per call.
    return 0.5 * jnp.tanh(0.5 * x) + 0.5


def _make_lstm_kernel(T_total, TC, ragged, unroll):
    """Recurrent hot path only: gates = gates_x[t] + h_{t-1} @ W_hh^T, then gate math."""

    def kernel(gx_ref, whh_hbm, h0_ref, c0_ref,          # inputs
               out_ref, cn_ref,                          # outputs
               whh_vmem, h_sc, c_sc, w_sem):             # scratch
        chunk = pl.program_id(1)
        Hp = h_sc.shape[-1]

        @pl.when(chunk == 0)
        def _prologue():
            # Start the single-buffered W_hh^T HBM->VMEM load (once per batch tile) and
            # overlap it with the h/c carry initialisation; wait just before first use.
            pltpu.make_async_copy(whh_hbm, whh_vmem, w_sem).start()
            h_sc[...] = h0_ref[...]
            c_sc[...] = c0_ref[...]

        @pl.when(chunk == 0)
        def _wait_weights():
            pltpu.make_async_copy(whh_hbm, whh_vmem, w_sem).wait()

        w_hh = whh_vmem[...]                 # [Hp, 4*Hp], loop invariant

        def step(i, carry):
            h_prev, c_prev = carry           # f32 vreg-resident carries
            gates = gx_ref[i].astype(jnp.float32) + jnp.dot(
                h_prev.astype(w_hh.dtype), w_hh, preferred_element_type=jnp.float32)
            # Lane-aligned gate slices (Hp multiple of 128); PyTorch gate order i, f, g, o.
            i_g = _sigmoid_via_tanh(gates[:, 0 * Hp:1 * Hp])
            f_g = _sigmoid_via_tanh(gates[:, 1 * Hp:2 * Hp])
            g_g = jnp.tanh(gates[:, 2 * Hp:3 * Hp])
            o_g = _sigmoid_via_tanh(gates[:, 3 * Hp:4 * Hp])
            c_new = f_g * c_prev + i_g * g_g
            h_new = o_g * jnp.tanh(c_new)
            if ragged:
                # Padded timesteps past T: freeze the carry (output rows past T are sliced off).
                valid = (chunk * TC + i) < T_total
                h_new = jnp.where(valid, h_new, h_prev)
                c_new = jnp.where(valid, c_new, c_prev)
            out_ref[i] = h_new.astype(out_ref.dtype)
            return (h_new, c_new)

        h_fin, c_fin = lax.fori_loop(0, TC, step, (h_sc[...], c_sc[...]), unroll=unroll)

        # Persist the carry across time chunks (one store per chunk, not per step).
        h_sc[...] = h_fin
        c_sc[...] = c_fin

        @pl.when(chunk == pl.num_programs(1) - 1)
        def _emit_cn():
            cn_ref[...] = c_fin.astype(cn_ref.dtype)

    return kernel


def lstm_pallas(x, w_ih, w_hh, b_ih, b_hh, h0=None, c0=None, *,
                param_dtype=jnp.bfloat16):
    """Single-layer LSTM. x: [T, B, I]. Returns (output [T,B,H], h_n [1,B,H], c_n [1,B,H])."""
    T, B, I = x.shape
    H = w_hh.shape[1]
    assert w_ih.shape == (4 * H, I) and w_hh.shape == (4 * H, H)

    f32 = jnp.float32
    param_dtype = jnp.dtype(param_dtype)
    gate_dtype = jnp.bfloat16 if param_dtype == jnp.bfloat16 else f32

    Hp = _round_up(H, 128)        # lane-align each gate block
    Bp = _round_up(B, 8)          # sublane-align batch

    # Batch tiling: split across the two v7x TensorCores only when they exist; on single-TC
    # chips an extra batch tile is just serial overhead plus a redundant W_hh reload.
    n_cores = _num_tensorcores()
    if n_cores >= 2 and Bp >= 16 and (Bp // 2) % 8 == 0:
        BT, NB = Bp // 2, 2
    else:
        BT, NB = Bp, 1
    # TODO(synk): with NB == 1 on v7x (B < 16), the second TensorCore stays idle.

    # ---- VMEM-budget-driven time-chunk selection (no TC=1 fallback for awkward T) ----
    budget = _vmem_budget_bytes()
    pd = param_dtype.itemsize
    gd = jnp.dtype(gate_dtype).itemsize
    fixed = (Hp * 4 * Hp * pd            # single-buffered W_hh^T scratch
             + 8 * BT * Hp * 4)          # h0/c0 blocks, h/c carries, c_n block (approx)
    per_step = 2 * BT * 4 * Hp * gd + 2 * BT * Hp * 4   # gates_x + out blocks, double-buffered
    assert fixed + per_step <= budget, (
        "LSTM hidden size too large for a VMEM-resident W_hh on this chip; shard H.")
    TC = 1
    for tc in (64, 32, 16, 8, 4, 2, 1):
        if tc <= T and fixed + tc * per_step <= int(0.9 * budget):
            TC = tc
            break
    T_pad = _round_up(T, TC)
    NCH = T_pad // TC
    ragged = (T_pad != T)
    # Cap unroll when per-step tiles are big (vreg pressure); full unroll for small tiles.
    unroll = TC if BT * 4 * Hp * 4 <= 64 * 1024 else min(TC, 8)

    x = x.astype(f32)

    # ---- hoisted input projection: ONE large matmul + bias fold (XLA -> MXU) ----
    wih_t = jnp.transpose(w_ih).reshape(I, 4, H).astype(f32)
    wih_t = jnp.pad(wih_t, ((0, 0), (0, 0), (0, Hp - H))).reshape(I, 4 * Hp)
    bias = (b_ih + b_hh).reshape(4, H).astype(f32)
    bias = jnp.pad(bias, ((0, 0), (0, Hp - H))).reshape(1, 4 * Hp)
    x_pad = jnp.pad(x, ((0, 0), (0, Bp - B), (0, 0)))
    gates_x = (jnp.dot(x_pad.reshape(T * Bp, I).astype(param_dtype),
                       wih_t.astype(param_dtype),
                       preferred_element_type=f32) + bias)
    gates_x = gates_x.astype(gate_dtype).reshape(T, Bp, 4 * Hp)
    if ragged:
        gates_x = jnp.pad(gates_x, ((0, T_pad - T), (0, 0), (0, 0)))

    # ---- recurrent weight: per-gate padded, MXU dtype (f32 accumulation inside the kernel) ----
    whh_t = jnp.transpose(w_hh).reshape(H, 4, H).astype(f32)
    whh_t = jnp.pad(whh_t, ((0, Hp - H), (0, 0), (0, Hp - H)))
    whh_t = whh_t.reshape(Hp, 4 * Hp).astype(param_dtype)

    def _prep_state(s):
        if s is None:
            return jnp.zeros((Bp, Hp), f32)
        s = jnp.asarray(s, f32)
        if s.ndim == 3:
            s = s[0]
        return jnp.pad(s, ((0, Bp - B), (0, Hp - H)))

    h0p = _prep_state(h0)
    c0p = _prep_state(c0)

    out_shapes = (
        jax.ShapeDtypeStruct((T_pad, Bp, Hp), f32),   # all hidden states
        jax.ShapeDtypeStruct((Bp, Hp), f32),          # final cell state
    )

    grid_spec = pltpu.PrefetchScalarGridSpec(
        num_scalar_prefetch=0,
        grid=(NB, NCH),                                               # (batch tiles, time chunks)
        in_specs=[
            pl.BlockSpec((TC, BT, 4 * Hp), lambda b, s: (s, b, 0)),   # gates_x chunk
            pl.BlockSpec(memory_space=pl.ANY),                        # W_hh^T stays in HBM
            pl.BlockSpec((BT, Hp), lambda b, s: (b, 0)),              # h0
            pl.BlockSpec((BT, Hp), lambda b, s: (b, 0)),              # c0
        ],
        out_specs=[
            pl.BlockSpec((TC, BT, Hp), lambda b, s: (s, b, 0)),       # output chunk
            pl.BlockSpec((BT, Hp), lambda b, s: (b, 0)),              # c_n (resident over time)
        ],
        scratch_shapes=[
            pltpu.VMEM((Hp, 4 * Hp), param_dtype),   # single-buffered W_hh^T copy
            pltpu.VMEM((BT, Hp), f32),               # h carry (between chunks)
            pltpu.VMEM((BT, Hp), f32),               # c carry (between chunks)
            pltpu.SemaphoreType.DMA(()),             # weight-load DMA semaphore
        ],
    )

    est = fixed + TC * per_step + (1 << 20)          # + margin for Mosaic internal scratch
    vmem_limit = None
    if est > 24 * 1024 * 1024:
        vmem_limit = min(int(est * 1.25), budget)

    kernel = _make_lstm_kernel(T, TC, ragged, unroll)
    out_pad, cn_pad = pl.pallas_call(
        kernel,
        out_shape=out_shapes,
        grid_spec=grid_spec,
        compiler_params=pltpu.CompilerParams(
            dimension_semantics=("parallel", "arbitrary"),   # time must stay sequential
            vmem_limit_bytes=vmem_limit),
    )(gates_x, whh_t, h0p, c0p)

    output = out_pad[:T, :B, :H]
    h_n = output[T - 1][None]            # h_n == output[-1]; not a separate kernel output
    c_n = cn_pad[None, :B, :H]
    return output, h_n, c_n


# ---- cellModule equivalent --------------------------------------------------

def using_skip_rnn(model):
    return model.lower() == 'skip_lstm' or model.lower() == 'skip_gru'


def split_rnn_outputs(model, rnn_outputs):
    if using_skip_rnn(model):
        return (rnn_outputs[0], rnn_outputs[1], rnn_outputs[2])
    else:
        return (rnn_outputs[0], rnn_outputs[1], None)


def cell_module_forward(params, model, x, hx=None, *, param_dtype=jnp.bfloat16):
    """JAX/Pallas equivalent of cellModule.forward with an LSTM cell (model='lstm')."""
    h0, c0 = (hx if hx is not None else (None, None))
    out, h_n, c_n = lstm_pallas(x, params["w_ih"], params["w_hh"],
                                params["b_ih"], params["b_hh"], h0, c0,
                                param_dtype=param_dtype)
    rnn_outputs = (out, (h_n, c_n))
    return split_rnn_outputs(model, rnn_outputs)


def _reference_lstm(x, w_ih, w_hh, b_ih, b_hh, h0=None, c0=None):
    """Pure-JAX reference for correctness check."""
    T, B, I = x.shape
    H = w_hh.shape[1]
    h = jnp.zeros((B, H), jnp.float32) if h0 is None else jnp.asarray(h0, jnp.float32).reshape(B, H)
    c = jnp.zeros((B, H), jnp.float32) if c0 is None else jnp.asarray(c0, jnp.float32).reshape(B, H)
    outs = []
    for t in range(T):
        gates = x[t] @ w_ih.T + h @ w_hh.T + b_ih + b_hh
        i_g = jax.nn.sigmoid(gates[:, 0 * H:1 * H])
        f_g = jax.nn.sigmoid(gates[:, 1 * H:2 * H])
        g_g = jnp.tanh(gates[:, 2 * H:3 * H])
        o_g = jax.nn.sigmoid(gates[:, 3 * H:4 * H])
        c = f_g * c + i_g * g_g
        h = o_g * jnp.tanh(c)
        outs.append(h)
    return jnp.stack(outs, 0), h[None], c[None]


if __name__ == "__main__":
    T, B, I, H = 8, 8, 32, 32
    key = jax.random.PRNGKey(0)
    kx, k1, k2, k3, k4, kh, kc, kr = jax.random.split(key, 8)

    x = jax.random.normal(kx, (T, B, I), jnp.float32)
    scale = 1.0 / jnp.sqrt(H)
    params = {
        "w_ih": jax.random.uniform(k1, (4 * H, I), jnp.float32, -scale, scale),
        "w_hh": jax.random.uniform(k2, (4 * H, H), jnp.float32, -scale, scale),
        "b_ih": jax.random.uniform(k3, (4 * H,), jnp.float32, -scale, scale),
        "b_hh": jax.random.uniform(k4, (4 * H,), jnp.float32, -scale, scale),
    }
    ref_out, ref_h, ref_c = _reference_lstm(x, params["w_ih"], params["w_hh"],
                                            params["b_ih"], params["b_hh"])

    # 1) f32 path (hx=None) — matches PyTorch nn.LSTM zero-init, tight tolerance
    output, (h_n, c_n), updated_state = cell_module_forward(
        params, "lstm", x, param_dtype=jnp.float32)
    jax.block_until_ready((output, h_n, c_n))
    assert updated_state is None
    assert jnp.allclose(output, ref_out, atol=1e-4), "output mismatch"
    assert jnp.allclose(h_n, ref_h, atol=1e-4), "h_n mismatch"
    assert jnp.allclose(c_n, ref_c, atol=1e-4), "c_n mismatch"

    # 2) explicit initial state hx=(h_0, c_0), f32 path
    h0 = 0.1 * jax.random.normal(kh, (1, B, H), jnp.float32)
    c0 = 0.1 * jax.random.normal(kc, (1, B, H), jnp.float32)
    out2, (h2, c2), _ = cell_module_forward(params, "lstm", x, hx=(h0, c0),
                                            param_dtype=jnp.float32)
    jax.block_until_ready(out2)
    ref_out2, ref_h2, ref_c2 = _reference_lstm(x, params["w_ih"], params["w_hh"],
                                               params["b_ih"], params["b_hh"], h0, c0)
    assert jnp.allclose(out2, ref_out2, atol=1e-4), "output mismatch (hx)"
    assert jnp.allclose(h2, ref_h2, atol=1e-4), "h_n mismatch (hx)"
    assert jnp.allclose(c2, ref_c2, atol=1e-4), "c_n mismatch (hx)"

    # 3) default bf16 fast path (bf16 W_hh / W_ih / gates_x, f32 accumulation) — loose tolerance
    out3, (h3, c3), _ = cell_module_forward(params, "lstm", x)
    jax.block_until_ready(out3)
    assert jnp.allclose(out3, ref_out, atol=5e-2), "output mismatch (bf16 default)"
    assert jnp.allclose(c3, ref_c, atol=5e-2), "c_n mismatch (bf16 default)"

    # 4) ragged time axis (T not divisible by the chosen chunk) — exercises padded/masked steps
    Tr = 13
    xr = jax.random.normal(kr, (Tr, B, I), jnp.float32)
    out4, (h4, c4), _ = cell_module_forward(params, "lstm", xr, param_dtype=jnp.float32)
    jax.block_until_ready(out4)
    ref_out4, ref_h4, ref_c4 = _reference_lstm(xr, params["w_ih"], params["w_hh"],
                                               params["b_ih"], params["b_hh"])
    assert jnp.allclose(out4, ref_out4, atol=1e-4), "output mismatch (ragged T)"
    assert jnp.allclose(h4, ref_h4, atol=1e-4), "h_n mismatch (ragged T)"
    assert jnp.allclose(c4, ref_c4, atol=1e-4), "c_n mismatch (ragged T)"

    print("KERNEL_OK")
</pallas_src>

<mosaic_0001>
module attributes {stable_mosaic.version = 11 : i64} {
  func.func @kernel(%arg0: i32, %arg1: i32, %arg2: memref<8x8x512xf32, #tpu.memory_space<vmem>>, %arg3: memref<128x512xf32, #tpu.memory_space<any>>, %arg4: memref<8x128xf32, #tpu.memory_space<vmem>>, %arg5: memref<8x128xf32, #tpu.memory_space<vmem>>, %arg6: memref<8x8x128xf32, #tpu.memory_space<vmem>>, %arg7: memref<8x128xf32, #tpu.memory_space<vmem>>, %arg8: memref<128x512xf32, #tpu.memory_space<vmem>>, %arg9: memref<8x128xf32, #tpu.memory_space<vmem>>, %arg10: memref<8x128xf32, #tpu.memory_space<vmem>>, %arg11: memref<!tpu.dma_semaphore, #tpu.memory_space<semaphore_mem>>) attributes {dimension_semantics = [#tpu.dimension_semantics<parallel>, #tpu.dimension_semantics<arbitrary>], iteration_bounds = array<i64: 1, 1>, scalar_prefetch = 0 : i64, scratch_operands = 4 : i64, tpu.core_type = #tpu.core_type<tc>, window_params = [{transform_indices = @transform_0, window_bounds = array<i64: 8, 8, 512>}, {}, {transform_indices = @transform_2, window_bounds = array<i64: 8, 128>}, {transform_indices = @transform_3, window_bounds = array<i64: 8, 128>}, {transform_indices = @transform_4, window_bounds = array<i64: 8, 8, 128>}, {transform_indices = @transform_5, window_bounds = array<i64: 8, 128>}]} {
    %c0_i32 = arith.constant 0 : i32
    %0 = arith.cmpi eq, %arg1, %c0_i32 : i32
    %1 = arith.extui %0 : i1 to i32
    %c0_i32_0 = arith.constant 0 : i32
    %2 = arith.cmpi ne, %1, %c0_i32_0 : i32
    scf.if %2 {
      tpu.enqueue_dma source(%arg3 : memref<128x512xf32, #tpu.memory_space<any>>) target(%arg8 : memref<128x512xf32, #tpu.memory_space<vmem>>) target_semaphore(%arg11 : memref<!tpu.dma_semaphore, #tpu.memory_space<semaphore_mem>>)
      %c0_126 = arith.constant 0 : index
      %c0_127 = arith.constant 0 : index
      %334 = vector.load %arg4[%c0_126, %c0_127] : memref<8x128xf32, #tpu.memory_space<vmem>>, vector<8x128xf32>
      %c0_128 = arith.constant 0 : index
      %c0_129 = arith.constant 0 : index
      %335 = vector.load %arg9[%c0_128, %c0_129] : memref<8x128xf32, #tpu.memory_space<vmem>>, vector<8x128xf32>
      tpu.vector_store %arg9[%c0_128, %c0_129], %334 {strides = array<i32>} : memref<8x128xf32, #tpu.memory_space<vmem>>, vector<8x128xf32>,
      %c0_130 = arith.constant 0 : index
      %c0_131 = arith.constant 0 : index
      %336 = vector.load %arg5[%c0_130, %c0_131] : memref<8x128xf32, #tpu.memory_space<vmem>>, vector<8x128xf32>
      %c0_132 = arith.constant 0 : index
      %c0_133 = arith.constant 0 : index
      %337 = vector.load %arg10[%c0_132, %c0_133] : memref<8x128xf32, #tpu.memory_space<vmem>>, vector<8x128xf32>
      tpu.vector_store %arg10[%c0_132, %c0_133], %336 {strides = array<i32>} : memref<8x128xf32, #tpu.memory_space<vmem>>, vector<8x128xf32>,
    } else {
    }
    %c0_i32_1 = arith.constant 0 : i32
    %3 = arith.cmpi eq, %arg1, %c0_i32_1 : i32
    %4 = arith.extui %3 : i1 to i32
    %c0_i32_2 = arith.constant 0 : i32
    %5 = arith.cmpi ne, %4, %c0_i32_2 : i32
    scf.if %5 {
      tpu.wait_dma2 semaphore(%arg11 : memref<!tpu.dma_semaphore, #tpu.memory_space<semaphore_mem>>) src(%arg3 : memref<128x512xf32, #tpu.memory_space<any>>) dst(%arg8 : memref<128x512xf32, #tpu.memory_space<vmem>>)
    } else {
    }
    %c0 = arith.constant 0 : index
    %c0_3 = arith.constant 0 : index
    %6 = vector.load %arg8[%c0, %c0_3] : memref<128x512xf32, #tpu.memory_space<vmem>>, vector<128x512xf32>
    %c0_4 = arith.constant 0 : index
    %c0_5 = arith.constant 0 : index
    %7 = vector.load %arg9[%c0_4, %c0_5] : memref<8x128xf32, #tpu.memory_space<vmem>>, vector<8x128xf32>
    %c0_6 = arith.constant 0 : index
    %c0_7 = arith.constant 0 : index
    %8 = vector.load %arg10[%c0_6, %c0_7] : memref<8x128xf32, #tpu.memory_space<vmem>>, vector<8x128xf32>
    %c0_i32_8 = arith.constant 0 : i32
    %9 = arith.index_cast %c0_i32_8 : i32 to index
    %c0_9 = arith.constant 0 : index
    %c0_10 = arith.constant 0 : index
    %10 = vector.load %arg2[%9, %c0_9, %c0_10] : memref<8x8x512xf32, #tpu.memory_space<vmem>>, vector<1x8x512xf32>
    %11 = vector.shape_cast %10 : vector<1x8x512xf32> to vector<8x512xf32>
    %cst = arith.constant dense<0.000000e+00> : vector<8x512xf32>
    %12 = tpu.matmul %7, %6, %cst {dimension_numbers = #tpu.dot_dimension_numbers<[1], [0], [0], [1], [0, 0, 1, 1], [], []>} : vector<8x128xf32>, vector<128x512xf32>, vector<8x512xf32> -> vector<8x512xf32>
    %13 = arith.addf %11, %12 : vector<8x512xf32>
    %14 = vector.extract_strided_slice %13 {offsets = [0, 0], sizes = [8, 128], strides = [1, 1]} : vector<8x512xf32> to vector<8x128xf32>
    %cst_11 = arith.constant 5.000000e-01 : f32
    %15 = vector.broadcast %cst_11 : f32 to vector<8x128xf32>
    %16 = arith.mulf %15, %14 : vector<8x128xf32>
    %17 = math.tanh %16 : vector<8x128xf32>
    %cst_12 = arith.constant 5.000000e-01 : f32
    %18 = vector.broadcast %cst_12 : f32 to vector<8x128xf32>
    %19 = arith.mulf %18, %17 : vector<8x128xf32>
    %cst_13 = arith.constant 5.000000e-01 : f32
    %20 = vector.broadcast %cst_13 : f32 to vector<8x128xf32>
    %21 = arith.addf %19, %20 : vector<8x128xf32>
    %22 = vector.extract_strided_slice %13 {offsets = [0, 128], sizes = [8, 128], strides = [1, 1]} : vector<8x512xf32> to vector<8x128xf32>
    %cst_14 = arith.constant 5.000000e-01 : f32
    %23 = vector.broadcast %cst_14 : f32 to vector<8x128xf32>
    %24 = arith.mulf %23, %22 : vector<8x128xf32>
    %25 = math.tanh %24 : vector<8x128xf32>
    %cst_15 = arith.constant 5.000000e-01 : f32
    %26 = vector.broadcast %cst_15 : f32 to vector<8x128xf32>
    %27 = arith.mulf %26, %25 : vector<8x128xf32>
    %cst_16 = arith.constant 5.000000e-01 : f32
    %28 = vector.broadcast %cst_16 : f32 to vector<8x128xf32>
    %29 = arith.addf %27, %28 : vector<8x128xf32>
    %30 = vector.extract_strided_slice %13 {offsets = [0, 256], sizes = [8, 128], strides = [1, 1]} : vector<8x512xf32> to vector<8x128xf32>
    %31 = math.tanh %30 : vector<8x128xf32>
    %32 = vector.extract_strided_slice %13 {offsets = [0, 384], sizes = [8, 128], strides = [1, 1]} : vector<8x512xf32> to vector<8x128xf32>
    %cst_17 = arith.constant 5.000000e-01 : f32
    %33 = vector.broadcast %cst_17 : f32 to vector<8x128xf32>
    %34 = arith.mulf %33, %32 : vector<8x128xf32>
    %35 = math.tanh %34 : vector<8x128xf32>
    %cst_18 = arith.constant 5.000000e-01 : f32
    %36 = vector.broadcast %cst_18 : f32 to vector<8x128xf32>
    %37 = arith.mulf %36, %35 : vector<8x128xf32>
    %cst_19 = arith.constant 5.000000e-01 : f32
    %38 = vector.broadcast %cst_19 : f32 to vector<8x128xf32>
    %39 = arith.addf %37, %38 : vector<8x128xf32>
    %40 = arith.mulf %29, %8 : vector<8x128xf32>
    %41 = arith.mulf %21, %31 : vector<8x128xf32>
    %42 = arith.addf %40, %41 : vector<8x128xf32>
    %43 = math.tanh %42 : vector<8x128xf32>
    %44 = arith.mulf %39, %43 : vector<8x128xf32>
    %45 = arith.index_cast %c0_i32_8 : i32 to index
    %c0_20 = arith.constant 0 : index
    %c0_21 = arith.constant 0 : index
    %46 = vector.load %arg6[%45, %c0_20, %c0_21] : memref<8x8x128xf32, #tpu.memory_space<vmem>>, vector<1x8x128xf32>
    %47 = vector.shape_cast %46 : vector<1x8x128xf32> to vector<8x128xf32>
    %48 = vector.shape_cast %44 : vector<8x128xf32> to vector<1x8x128xf32>
    tpu.vector_store %arg6[%45, %c0_20, %c0_21], %48 {strides = array<i32>} : memref<8x8x128xf32, #tpu.memory_space<vmem>>, vector<1x8x128xf32>,
    %c1_i32 = arith.constant 1 : i32
    %49 = arith.index_cast %c1_i32 : i32 to index
    %c0_22 = arith.constant 0 : index
    %c0_23 = arith.constant 0 : index
    %50 = vector.load %arg2[%49, %c0_22, %c0_23] : memref<8x8x512xf32, #tpu.memory_space<vmem>>, vector<1x8x512xf32>
    %51 = vector.shape_cast %50 : vector<1x8x512xf32> to vector<8x512xf32>
    %cst_24 = arith.constant dense<0.000000e+00> : vector<8x512xf32>
    %52 = tpu.matmul %44, %6, %cst_24 {dimension_numbers = #tpu.dot_dimension_numbers<[1], [0], [0], [1], [0, 0, 1, 1], [], []>} : vector<8x128xf32>, vector<128x512xf32>, vector<8x512xf32> -> vector<8x512xf32>
    %53 = arith.addf %51, %52 : vector<8x512xf32>
    %54 = vector.extract_strided_slice %53 {offsets = [0, 0], sizes = [8, 128], strides = [1, 1]} : vector<8x512xf32> to vector<8x128xf32>
    %cst_25 = arith.constant 5.000000e-01 : f32
    %55 = vector.broadcast %cst_25 : f32 to vector<8x128xf32>
    %56 = arith.mulf %55, %54 : vector<8x128xf32>
    %57 = math.tanh %56 : vector<8x128xf32>
    %cst_26 = arith.constant 5.000000e-01 : f32
    %58 = vector.broadcast %cst_26 : f32 to vector<8x128xf32>
    %59 = arith.mulf %58, %57 : vector<8x128xf32>
    %cst_27 = arith.constant 5.000000e-01 : f32
    %60 = vector.broadcast %cst_27 : f32 to vector<8x128xf32>
    %61 = arith.addf %59, %60 : vector<8x128xf32>
    %62 = vector.extract_strided_slice %53 {offsets = [0, 128], sizes = [8, 128], strides = [1, 1]} : vector<8x512xf32> to vector<8x128xf32>
    %cst_28 = arith.constant 5.000000e-01 : f32
    %63 = vector.broadcast %cst_28 : f32 to vector<8x128xf32>
    %64 = arith.mulf %63, %62 : vector<8x128xf32>
    %65 = math.tanh %64 : vector<8x128xf32>
    %cst_29 = arith.constant 5.000000e-01 : f32
    %66 = vector.broadcast %cst_29 : f32 to vector<8x128xf32>
    %67 = arith.mulf %66, %65 : vector<8x128xf32>
    %cst_30 = arith.constant 5.000000e-01 : f32
    %68 = vector.broadcast %cst_30 : f32 to vector<8x128xf32>
    %69 = arith.addf %67, %68 : vector<8x128xf32>
    %70 = vector.extract_strided_slice %53 {offsets = [0, 256], sizes = [8, 128], strides = [1, 1]} : vector<8x512xf32> to vector<8x128xf32>
    %71 = math.tanh %70 : vector<8x128xf32>
    %72 = vector.extract_strided_slice %53 {offsets = [0, 384], sizes = [8, 128], strides = [1, 1]} : vector<8x512xf32> to vector<8x128xf32>
    %cst_31 = arith.constant 5.000000e-01 : f32
    %73 = vector.broadcast %cst_31 : f32 to vector<8x128xf32>
    %74 = arith.mulf %73, %72 : vector<8x128xf32>
    %75 = math.tanh %74 : vector<8x128xf32>
    %cst_32 = arith.constant 5.000000e-01 : f32
    %76 = vector.broadcast %cst_32 : f32 to vector<8x128xf32>
    %77 = arith.mulf %76, %75 : vector<8x128xf32>
    %cst_33 = arith.constant 5.000000e-01 : f32
    %78 = vector.broadcast %cst_33 : f32 to vector<8x128xf32>
    %79 = arith.addf %77, %78 : vector<8x128xf32>
    %80 = arith.mulf %69, %42 : vector<8x128xf32>
    %81 = arith.mulf %61, %71 : vector<8x128xf32>
    %82 = arith.addf %80, %81 : vector<8x128xf32>
    %83 = math.tanh %82 : vector<8x128xf32>
    %84 = arith.mulf %79, %83 : vector<8x128xf32>
    %85 = arith.index_cast %c1_i32 : i32 to index
    %c0_34 = arith.constant 0 : index
    %c0_35 = arith.constant 0 : index
    %86 = vector.load %arg6[%85, %c0_34, %c0_35] : memref<8x8x128xf32, #tpu.memory_space<vmem>>, vector<1x8x128xf32>
    %87 = vector.shape_cast %86 : vector<1x8x128xf32> to vector<8x128xf32>
    %88 = vector.shape_cast %84 : vector<8x128xf32> to vector<1x8x128xf32>
    tpu.vector_store %arg6[%85, %c0_34, %c0_35], %88 {strides = array<i32>} : memref<8x8x128xf32, #tpu.memory_space<vmem>>, vector<1x8x128xf32>,
    %c2_i32 = arith.constant 2 : i32
    %89 = arith.index_cast %c2_i32 : i32 to index
    %c0_36 = arith.constant 0 : index
    %c0_37 = arith.constant 0 : index
    %90 = vector.load %arg2[%89, %c0_36, %c0_37] : memref<8x8x512xf32, #tpu.memory_space<vmem>>, vector<1x8x512xf32>
    %91 = vector.shape_cast %90 : vector<1x8x512xf32> to vector<8x512xf32>
    %cst_38 = arith.constant dense<0.000000e+00> : vector<8x512xf32>
    %92 = tpu.matmul %84, %6, %cst_38 {dimension_numbers = #tpu.dot_dimension_numbers<[1], [0], [0], [1], [0, 0, 1, 1], [], []>} : vector<8x128xf32>, vector<128x512xf32>, vector<8x512xf32> -> vector<8x512xf32>
    %93 = arith.addf %91, %92 : vector<8x512xf32>
    %94 = vector.extract_strided_slice %93 {offsets = [0, 0], sizes = [8, 128], strides = [1, 1]} : vector<8x512xf32> to vector<8x128xf32>
    %cst_39 = arith.constant 5.000000e-01 : f32
    %95 = vector.broadcast %cst_39 : f32 to vector<8x128xf32>
    %96 = arith.mulf %95, %94 : vector<8x128xf32>
    %97 = math.tanh %96 : vector<8x128xf32>
    %cst_40 = arith.constant 5.000000e-01 : f32
    %98 = vector.broadcast %cst_40 : f32 to vector<8x128xf32>
    %99 = arith.mulf %98, %97 : vector<8x128xf32>
    %cst_41 = arith.constant 5.000000e-01 : f32
    %100 = vector.broadcast %cst_41 : f32 to vector<8x128xf32>
    %101 = arith.addf %99, %100 : vector<8x128xf32>
    %102 = vector.extract_strided_slice %93 {offsets = [0, 128], sizes = [8, 128], strides = [1, 1]} : vector<8x512xf32> to vector<8x128xf32>
    %cst_42 = arith.constant 5.000000e-01 : f32
    %103 = vector.broadcast %cst_42 : f32 to vector<8x128xf32>
    %104 = arith.mulf %103, %102 : vector<8x128xf32>
    %105 = math.tanh %104 : vector<8x128xf32>
    %cst_43 = arith.constant 5.000000e-01 : f32
    %106 = vector.broadcast %cst_43 : f32 to vector<8x128xf32>
    %107 = arith.mulf %106, %105 : vector<8x128xf32>
    %cst_44 = arith.constant 5.000000e-01 : f32
    %108 = vector.broadcast %cst_44 : f32 to vector<8x128xf32>
    %109 = arith.addf %107, %108 : vector<8x128xf32>
    %110 = vector.extract_strided_slice %93 {offsets = [0, 256], sizes = [8, 128], strides = [1, 1]} : vector<8x512xf32> to vector<8x128xf32>
    %111 = math.tanh %110 : vector<8x128xf32>
    %112 = vector.extract_strided_slice %93 {offsets = [0, 384], sizes = [8, 128], strides = [1, 1]} : vector<8x512xf32> to vector<8x128xf32>
    %cst_45 = arith.constant 5.000000e-01 : f32
    %113 = vector.broadcast %cst_45 : f32 to vector<8x128xf32>
    %114 = arith.mulf %113, %112 : vector<8x128xf32>
    %115 = math.tanh %114 : vector<8x128xf32>
    %cst_46 = arith.constant 5.000000e-01 : f32
    %116 = vector.broadcast %cst_46 : f32 to vector<8x128xf32>
    %117 = arith.mulf %116, %115 : vector<8x128xf32>
    %cst_47 = arith.constant 5.000000e-01 : f32
    %118 = vector.broadcast %cst_47 : f32 to vector<8x128xf32>
    %119 = arith.addf %117, %118 : vector<8x128xf32>
    %120 = arith.mulf %109, %82 : vector<8x128xf32>
    %121 = arith.mulf %101, %111 : vector<8x128xf32>
    %122 = arith.addf %120, %121 : vector<8x128xf32>
    %123 = math.tanh %122 : vector<8x128xf32>
    %124 = arith.mulf %119, %123 : vector<8x128xf32>
    %125 = arith.index_cast %c2_i32 : i32 to index
    %c0_48 = arith.constant 0 : index
    %c0_49 = arith.constant 0 : index
    %126 = vector.load %arg6[%125, %c0_48, %c0_49] : memref<8x8x128xf32, #tpu.memory_space<vmem>>, vector<1x8x128xf32>
    %127 = vector.shape_cast %126 : vector<1x8x128xf32> to vector<8x128xf32>
    %128 = vector.shape_cast %124 : vector<8x128xf32> to vector<1x8x128xf32>
    tpu.vector_store %arg6[%125, %c0_48, %c0_49], %128 {strides = array<i32>} : memref<8x8x128xf32, #tpu.memory_space<vmem>>, vector<1x8x128xf32>,
    %c3_i32 = arith.constant 3 : i32
    %129 = arith.index_cast %c3_i32 : i32 to index
    %c0_50 = arith.constant 0 : index
    %c0_51 = arith.constant 0 : index
    %130 = vector.load %arg2[%129, %c0_50, %c0_51] : memref<8x8x512xf32, #tpu.memory_space<vmem>>, vector<1x8x512xf32>
    %131 = vector.shape_cast %130 : vector<1x8x512xf32> to vector<8x512xf32>
    %cst_52 = arith.constant dense<0.000000e+00> : vector<8x512xf32>
    %132 = tpu.matmul %124, %6, %cst_52 {dimension_numbers = #tpu.dot_dimension_numbers<[1], [0], [0], [1], [0, 0, 1, 1], [], []>} : vector<8x128xf32>, vector<128x512xf32>, vector<8x512xf32> -> vector<8x512xf32>
    %133 = arith.addf %131, %132 : vector<8x512xf32>
    %134 = vector.extract_strided_slice %133 {offsets = [0, 0], sizes = [8, 128], strides = [1, 1]} : vector<8x512xf32> to vector<8x128xf32>
    %cst_53 = arith.constant 5.000000e-01 : f32
    %135 = vector.broadcast %cst_53 : f32 to vector<8x128xf32>
    %136 = arith.mulf %135, %134 : vector<8x128xf32>
    %137 = math.tanh %136 : vector<8x128xf32>
    %cst_54 = arith.constant 5.000000e-01 : f32
    %138 = vector.broadcast %cst_54 : f32 to vector<8x128xf32>
    %139 = arith.mulf %138, %137 : vector<8x128xf32>
    %cst_55 = arith.constant 5.000000e-01 : f32
    %140 = vector.broadcast %cst_55 : f32 to vector<8x128xf32>
    %141 = arith.addf %139, %140 : vector<8x128xf32>
    %142 = vector.extract_strided_slice %133 {offsets = [0, 128], sizes = [8, 128], strides = [1, 1]} : vector<8x512xf32> to vector<8x128xf32>
    %cst_56 = arith.constant 5.000000e-01 : f32
    %143 = vector.broadcast %cst_56 : f32 to vector<8x128xf32>
    %144 = arith.mulf %143, %142 : vector<8x128xf32>
    %145 = math.tanh %144 : vector<8x128xf32>
    %cst_57 = arith.constant 5.000000e-01 : f32
    %146 = vector.broadcast %cst_57 : f32 to vector<8x128xf32>
    %147 = arith.mulf %146, %145 : vector<8x128xf32>
    %cst_58 = arith.constant 5.000000e-01 : f32
    %148 = vector.broadcast %cst_58 : f32 to vector<8x128xf32>
    %149 = arith.addf %147, %148 : vector<8x128xf32>
    %150 = vector.extract_strided_slice %133 {offsets = [0, 256], sizes = [8, 128], strides = [1, 1]} : vector<8x512xf32> to vector<8x128xf32>
    %151 = math.tanh %150 : vector<8x128xf32>
    %152 = vector.extract_strided_slice %133 {offsets = [0, 384], sizes = [8, 128], strides = [1, 1]} : vector<8x512xf32> to vector<8x128xf32>
    %cst_59 = arith.constant 5.000000e-01 : f32
    %153 = vector.broadcast %cst_59 : f32 to vector<8x128xf32>
    %154 = arith.mulf %153, %152 : vector<8x128xf32>
    %155 = math.tanh %154 : vector<8x128xf32>
    %cst_60 = arith.constant 5.000000e-01 : f32
    %156 = vector.broadcast %cst_60 : f32 to vector<8x128xf32>
    %157 = arith.mulf %156, %155 : vector<8x128xf32>
    %cst_61 = arith.constant 5.000000e-01 : f32
    %158 = vector.broadcast %cst_61 : f32 to vector<8x128xf32>
    %159 = arith.addf %157, %158 : vector<8x128xf32>
    %160 = arith.mulf %149, %122 : vector<8x128xf32>
    %161 = arith.mulf %141, %151 : vector<8x128xf32>
    %162 = arith.addf %160, %161 : vector<8x128xf32>
    %163 = math.tanh %162 : vector<8x128xf32>
    %164 = arith.mulf %159, %163 : vector<8x128xf32>
    %165 = arith.index_cast %c3_i32 : i32 to index
    %c0_62 = arith.constant 0 : index
    %c0_63 = arith.constant 0 : index
    %166 = vector.load %arg6[%165, %c0_62, %c0_63] : memref<8x8x128xf32, #tpu.memory_space<vmem>>, vector<1x8x128xf32>
    %167 = vector.shape_cast %166 : vector<1x8x128xf32> to vector<8x128xf32>
    %168 = vector.shape_cast %164 : vector<8x128xf32> to vector<1x8x128xf32>
    tpu.vector_store %arg6[%165, %c0_62, %c0_63], %168 {strides = array<i32>} : memref<8x8x128xf32, #tpu.memory_space<vmem>>, vector<1x8x128xf32>,
    %c4_i32 = arith.constant 4 : i32
    %169 = arith.index_cast %c4_i32 : i32 to index
    %c0_64 = arith.constant 0 : index
    %c0_65 = arith.constant 0 : index
    %170 = vector.load %arg2[%169, %c0_64, %c0_65] : memref<8x8x512xf32, #tpu.memory_space<vmem>>, vector<1x8x512xf32>
    %171 = vector.shape_cast %170 : vector<1x8x512xf32> to vector<8x512xf32>
    %cst_66 = arith.constant dense<0.000000e+00> : vector<8x512xf32>
    %172 = tpu.matmul %164, %6, %cst_66 {dimension_numbers = #tpu.dot_dimension_numbers<[1], [0], [0], [1], [0, 0, 1, 1], [], []>} : vector<8x128xf32>, vector<128x512xf32>, vector<8x512xf32> -> vector<8x512xf32>
    %173 = arith.addf %171, %172 : vector<8x512xf32>
    %174 = vector.extract_strided_slice %173 {offsets = [0, 0], sizes = [8, 128], strides = [1, 1]} : vector<8x512xf32> to vector<8x128xf32>
    %cst_67 = arith.constant 5.000000e-01 : f32
    %175 = vector.broadcast %cst_67 : f32 to vector<8x128xf32>
    %176 = arith.mulf %175, %174 : vector<8x128xf32>
    %177 = math.tanh %176 : vector<8x128xf32>
    %cst_68 = arith.constant 5.000000e-01 : f32
    %178 = vector.broadcast %cst_68 : f32 to vector<8x128xf32>
    %179 = arith.mulf %178, %177 : vector<8x128xf32>
    %cst_69 = arith.constant 5.000000e-01 : f32
    %180 = vector.broadcast %cst_69 : f32 to vector<8x128xf32>
    %181 = arith.addf %179, %180 : vector<8x128xf32>
    %182 = vector.extract_strided_slice %173 {offsets = [0, 128], sizes = [8, 128], strides = [1, 1]} : vector<8x512xf32> to vector<8x128xf32>
    %cst_70 = arith.constant 5.000000e-01 : f32
    %183 = vector.broadcast %cst_70 : f32 to vector<8x128xf32>
    %184 = arith.mulf %183, %182 : vector<8x128xf32>
    %185 = math.tanh %184 : vector<8x128xf32>
    %cst_71 = arith.constant 5.000000e-01 : f32
    %186 = vector.broadcast %cst_71 : f32 to vector<8x128xf32>
    %187 = arith.mulf %186, %185 : vector<8x128xf32>
    %cst_72 = arith.constant 5.000000e-01 : f32
    %188 = vector.broadcast %cst_72 : f32 to vector<8x128xf32>
    %189 = arith.addf %187, %188 : vector<8x128xf32>
    %190 = vector.extract_strided_slice %173 {offsets = [0, 256], sizes = [8, 128], strides = [1, 1]} : vector<8x512xf32> to vector<8x128xf32>
    %191 = math.tanh %190 : vector<8x128xf32>
    %192 = vector.extract_strided_slice %173 {offsets = [0, 384], sizes = [8, 128], strides = [1, 1]} : vector<8x512xf32> to vector<8x128xf32>
    %cst_73 = arith.constant 5.000000e-01 : f32
    %193 = vector.broadcast %cst_73 : f32 to vector<8x128xf32>
    %194 = arith.mulf %193, %192 : vector<8x128xf32>
    %195 = math.tanh %194 : vector<8x128xf32>
    %cst_74 = arith.constant 5.000000e-01 : f32
    %196 = vector.broadcast %cst_74 : f32 to vector<8x128xf32>
    %197 = arith.mulf %196, %195 : vector<8x128xf32>
    %cst_75 = arith.constant 5.000000e-01 : f32
    %198 = vector.broadcast %cst_75 : f32 to vector<8x128xf32>
    %199 = arith.addf %197, %198 : vector<8x128xf32>
    %200 = arith.mulf %189, %162 : vector<8x128xf32>
    %201 = arith.mulf %181, %191 : vector<8x128xf32>
    %202 = arith.addf %200, %201 : vector<8x128xf32>
    %203 = math.tanh %202 : vector<8x128xf32>
    %204 = arith.mulf %199, %203 : vector<8x128xf32>
    %205 = arith.index_cast %c4_i32 : i32 to index
    %c0_76 = arith.constant 0 : index
    %c0_77 = arith.constant 0 : index
    %206 = vector.load %arg6[%205, %c0_76, %c0_77] : memref<8x8x128xf32, #tpu.memory_space<vmem>>, vector<1x8x128xf32>
    %207 = vector.shape_cast %206 : vector<1x8x128xf32> to vector<8x128xf32>
    %208 = vector.shape_cast %204 : vector<8x128xf32> to vector<1x8x128xf32>
    tpu.vector_store %arg6[%205, %c0_76, %c0_77], %208 {strides = array<i32>} : memref<8x8x128xf32, #tpu.memory_space<vmem>>, vector<1x8x128xf32>,
    %c5_i32 = arith.constant 5 : i32
    %209 = arith.index_cast %c5_i32 : i32 to index
    %c0_78 = arith.constant 0 : index
    %c0_79 = arith.constant 0 : index
    %210 = vector.load %arg2[%209, %c0_78, %c0_79] : memref<8x8x512xf32, #tpu.memory_space<vmem>>, vector<1x8x512xf32>
    %211 = vector.shape_cast %210 : vector<1x8x512xf32> to vector<8x512xf32>
    %cst_80 = arith.constant dense<0.000000e+00> : vector<8x512xf32>
    %212 = tpu.matmul %204, %6, %cst_80 {dimension_numbers = #tpu.dot_dimension_numbers<[1], [0], [0], [1], [0, 0, 1, 1], [], []>} : vector<8x128xf32>, vector<128x512xf32>, vector<8x512xf32> -> vector<8x512xf32>
    %213 = arith.addf %211, %212 : vector<8x512xf32>
    %214 = vector.extract_strided_slice %213 {offsets = [0, 0], sizes = [8, 128], strides = [1, 1]} : vector<8x512xf32> to vector<8x128xf32>
    %cst_81 = arith.constant 5.000000e-01 : f32
    %215 = vector.broadcast %cst_81 : f32 to vector<8x128xf32>
    %216 = arith.mulf %215, %214 : vector<8x128xf32>
    %217 = math.tanh %216 : vector<8x128xf32>
    %cst_82 = arith.constant 5.000000e-01 : f32
    %218 = vector.broadcast %cst_82 : f32 to vector<8x128xf32>
    %219 = arith.mulf %218, %217 : vector<8x128xf32>
    %cst_83 = arith.constant 5.000000e-01 : f32
    %220 = vector.broadcast %cst_83 : f32 to vector<8x128xf32>
    %221 = arith.addf %219, %220 : vector<8x128xf32>
    %222 = vector.extract_strided_slice %213 {offsets = [0, 128], sizes = [8, 128], strides = [1, 1]} : vector<8x512xf32> to vector<8x128xf32>
    %cst_84 = arith.constant 5.000000e-01 : f32
    %223 = vector.broadcast %cst_84 : f32 to vector<8x128xf32>
    %224 = arith.mulf %223, %222 : vector<8x128xf32>
    %225 = math.tanh %224 : vector<8x128xf32>
    %cst_85 = arith.constant 5.000000e-01 : f32
    %226 = vector.broadcast %cst_85 : f32 to vector<8x128xf32>
    %227 = arith.mulf %226, %225 : vector<8x128xf32>
    %cst_86 = arith.constant 5.000000e-01 : f32
    %228 = vector.broadcast %cst_86 : f32 to vector<8x128xf32>
    %229 = arith.addf %227, %228 : vector<8x128xf32>
    %230 = vector.extract_strided_slice %213 {offsets = [0, 256], sizes = [8, 128], strides = [1, 1]} : vector<8x512xf32> to vector<8x128xf32>
    %231 = math.tanh %230 : vector<8x128xf32>
    %232 = vector.extract_strided_slice %213 {offsets = [0, 384], sizes = [8, 128], strides = [1, 1]} : vector<8x512xf32> to vector<8x128xf32>
    %cst_87 = arith.constant 5.000000e-01 : f32
    %233 = vector.broadcast %cst_87 : f32 to vector<8x128xf32>
    %234 = arith.mulf %233, %232 : vector<8x128xf32>
    %235 = math.tanh %234 : vector<8x128xf32>
    %cst_88 = arith.constant 5.000000e-01 : f32
    %236 = vector.broadcast %cst_88 : f32 to vector<8x128xf32>
    %237 = arith.mulf %236, %235 : vector<8x128xf32>
    %cst_89 = arith.constant 5.000000e-01 : f32
    %238 = vector.broadcast %cst_89 : f32 to vector<8x128xf32>
    %239 = arith.addf %237, %238 : vector<8x128xf32>
    %240 = arith.mulf %229, %202 : vector<8x128xf32>
    %241 = arith.mulf %221, %231 : vector<8x128xf32>
    %242 = arith.addf %240, %241 : vector<8x128xf32>
    %243 = math.tanh %242 : vector<8x128xf32>
    %244 = arith.mulf %239, %243 : vector<8x128xf32>
    %245 = arith.index_cast %c5_i32 : i32 to index
    %c0_90 = arith.constant 0 : index
    %c0_91 = arith.constant 0 : index
    %246 = vector.load %arg6[%245, %c0_90, %c0_91] : memref<8x8x128xf32, #tpu.memory_space<vmem>>, vector<1x8x128xf32>
    %247 = vector.shape_cast %246 : vector<1x8x128xf32> to vector<8x128xf32>
    %248 = vector.shape_cast %244 : vector<8x128xf32> to vector<1x8x128xf32>
    tpu.vector_store %arg6[%245, %c0_90, %c0_91], %248 {strides = array<i32>} : memref<8x8x128xf32, #tpu.memory_space<vmem>>, vector<1x8x128xf32>,
    %c6_i32 = arith.constant 6 : i32
    %249 = arith.index_cast %c6_i32 : i32 to index
    %c0_92 = arith.constant 0 : index
    %c0_93 = arith.constant 0 : index
    %250 = vector.load %arg2[%249, %c0_92, %c0_93] : memref<8x8x512xf32, #tpu.memory_space<vmem>>, vector<1x8x512xf32>
    %251 = vector.shape_cast %250 : vector<1x8x512xf32> to vector<8x512xf32>
    %cst_94 = arith.constant dense<0.000000e+00> : vector<8x512xf32>
    %252 = tpu.matmul %244, %6, %cst_94 {dimension_numbers = #tpu.dot_dimension_numbers<[1], [0], [0], [1], [0, 0, 1, 1], [], []>} : vector<8x128xf32>, vector<128x512xf32>, vector<8x512xf32> -> vector<8x512xf32>
    %253 = arith.addf %251, %252 : vector<8x512xf32>
    %254 = vector.extract_strided_slice %253 {offsets = [0, 0], sizes = [8, 128], strides = [1, 1]} : vector<8x512xf32> to vector<8x128xf32>
    %cst_95 = arith.constant 5.000000e-01 : f32
    %255 = vector.broadcast %cst_95 : f32 to vector<8x128xf32>
    %256 = arith.mulf %255, %254 : vector<8x128xf32>
    %257 = math.tanh %256 : vector<8x128xf32>
    %cst_96 = arith.constant 5.000000e-01 : f32
    %258 = vector.broadcast %cst_96 : f32 to vector<8x128xf32>
    %259 = arith.mulf %258, %257 : vector<8x128xf32>
    %cst_97 = arith.constant 5.000000e-01 : f32
    %260 = vector.broadcast %cst_97 : f32 to vector<8x128xf32>
    %261 = arith.addf %259, %260 : vector<8x128xf32>
    %262 = vector.extract_strided_slice %253 {offsets = [0, 128], sizes = [8, 128], strides = [1, 1]} : vector<8x512xf32> to vector<8x128xf32>
    %cst_98 = arith.constant 5.000000e-01 : f32
    %263 = vector.broadcast %cst_98 : f32 to vector<8x128xf32>
    %264 = arith.mulf %263, %262 : vector<8x128xf32>
    %265 = math.tanh %264 : vector<8x128xf32>
    %cst_99 = arith.constant 5.000000e-01 : f32
    %266 = vector.broadcast %cst_99 : f32 to vector<8x128xf32>
    %267 = arith.mulf %266, %265 : vector<8x128xf32>
    %cst_100 = arith.constant 5.000000e-01 : f32
    %268 = vector.broadcast %cst_100 : f32 to vector<8x128xf32>
    %269 = arith.addf %267, %268 : vector<8x128xf32>
    %270 = vector.extract_strided_slice %253 {offsets = [0, 256], sizes = [8, 128], strides = [1, 1]} : vector<8x512xf32> to vector<8x128xf32>
    %271 = math.tanh %270 : vector<8x128xf32>
    %272 = vector.extract_strided_slice %253 {offsets = [0, 384], sizes = [8, 128], strides = [1, 1]} : vector<8x512xf32> to vector<8x128xf32>
    %cst_101 = arith.constant 5.000000e-01 : f32
    %273 = vector.broadcast %cst_101 : f32 to vector<8x128xf32>
    %274 = arith.mulf %273, %272 : vector<8x128xf32>
    %275 = math.tanh %274 : vector<8x128xf32>
    %cst_102 = arith.constant 5.000000e-01 : f32
    %276 = vector.broadcast %cst_102 : f32 to vector<8x128xf32>
    %277 = arith.mulf %276, %275 : vector<8x128xf32>
    %cst_103 = arith.constant 5.000000e-01 : f32
    %278 = vector.broadcast %cst_103 : f32 to vector<8x128xf32>
    %279 = arith.addf %277, %278 : vector<8x128xf32>
    %280 = arith.mulf %269, %242 : vector<8x128xf32>
    %281 = arith.mulf %261, %271 : vector<8x128xf32>
    %282 = arith.addf %280, %281 : vector<8x128xf32>
    %283 = math.tanh %282 : vector<8x128xf32>
    %284 = arith.mulf %279, %283 : vector<8x128xf32>
    %285 = arith.index_cast %c6_i32 : i32 to index
    %c0_104 = arith.constant 0 : index
    %c0_105 = arith.constant 0 : index
    %286 = vector.load %arg6[%285, %c0_104, %c0_105] : memref<8x8x128xf32, #tpu.memory_space<vmem>>, vector<1x8x128xf32>
    %287 = vector.shape_cast %286 : vector<1x8x128xf32> to vector<8x128xf32>
    %288 = vector.shape_cast %284 : vector<8x128xf32> to vector<1x8x128xf32>
    tpu.vector_store %arg6[%285, %c0_104, %c0_105], %288 {strides = array<i32>} : memref<8x8x128xf32, #tpu.memory_space<vmem>>, vector<1x8x128xf32>,
    %c7_i32 = arith.constant 7 : i32
    %289 = arith.index_cast %c7_i32 : i32 to index
    %c0_106 = arith.constant 0 : index
    %c0_107 = arith.constant 0 : index
    %290 = vector.load %arg2[%289, %c0_106, %c0_107] : memref<8x8x512xf32, #tpu.memory_space<vmem>>, vector<1x8x512xf32>
    %291 = vector.shape_cast %290 : vector<1x8x512xf32> to vector<8x512xf32>
    %cst_108 = arith.constant dense<0.000000e+00> : vector<8x512xf32>
    %292 = tpu.matmul %284, %6, %cst_108 {dimension_numbers = #tpu.dot_dimension_numbers<[1], [0], [0], [1], [0, 0, 1, 1], [], []>} : vector<8x128xf32>, vector<128x512xf32>, vector<8x512xf32> -> vector<8x512xf32>
    %293 = arith.addf %291, %292 : vector<8x512xf32>
    %294 = vector.extract_strided_slice %293 {offsets = [0, 0], sizes = [8, 128], strides = [1, 1]} : vector<8x512xf32> to vector<8x128xf32>
    %cst_109 = arith.constant 5.000000e-01 : f32
    %295 = vector.broadcast %cst_109 : f32 to vector<8x128xf32>
    %296 = arith.mulf %295, %294 : vector<8x128xf32>
    %297 = math.tanh %296 : vector<8x128xf32>
    %cst_110 = arith.constant 5.000000e-01 : f32
    %298 = vector.broadcast %cst_110 : f32 to vector<8x128xf32>
    %299 = arith.mulf %298, %297 : vector<8x128xf32>
    %cst_111 = arith.constant 5.000000e-01 : f32
    %300 = vector.broadcast %cst_111 : f32 to vector<8x128xf32>
    %301 = arith.addf %299, %300 : vector<8x128xf32>
    %302 = vector.extract_strided_slice %293 {offsets = [0, 128], sizes = [8, 128], strides = [1, 1]} : vector<8x512xf32> to vector<8x128xf32>
    %cst_112 = arith.constant 5.000000e-01 : f32
    %303 = vector.broadcast %cst_112 : f32 to vector<8x128xf32>
    %304 = arith.mulf %303, %302 : vector<8x128xf32>
    %305 = math.tanh %304 : vector<8x128xf32>
    %cst_113 = arith.constant 5.000000e-01 : f32
    %306 = vector.broadcast %cst_113 : f32 to vector<8x128xf32>
    %307 = arith.mulf %306, %305 : vector<8x128xf32>
    %cst_114 = arith.constant 5.000000e-01 : f32
    %308 = vector.broadcast %cst_114 : f32 to vector<8x128xf32>
    %309 = arith.addf %307, %308 : vector<8x128xf32>
    %310 = vector.extract_strided_slice %293 {offsets = [0, 256], sizes = [8, 128], strides = [1, 1]} : vector<8x512xf32> to vector<8x128xf32>
    %311 = math.tanh %310 : vector<8x128xf32>
    %312 = vector.extract_strided_slice %293 {offsets = [0, 384], sizes = [8, 128], strides = [1, 1]} : vector<8x512xf32> to vector<8x128xf32>
    %cst_115 = arith.constant 5.000000e-01 : f32
    %313 = vector.broadcast %cst_115 : f32 to vector<8x128xf32>
    %314 = arith.mulf %313, %312 : vector<8x128xf32>
    %315 = math.tanh %314 : vector<8x128xf32>
    %cst_116 = arith.constant 5.000000e-01 : f32
    %316 = vector.broadcast %cst_116 : f32 to vector<8x128xf32>
    %317 = arith.mulf %316, %315 : vector<8x128xf32>
    %cst_117 = arith.constant 5.000000e-01 : f32
    %318 = vector.broadcast %cst_117 : f32 to vector<8x128xf32>
    %319 = arith.addf %317, %318 : vector<8x128xf32>
    %320 = arith.mulf %309, %282 : vector<8x128xf32>
    %321 = arith.mulf %301, %311 : vector<8x128xf32>
    %322 = arith.addf %320, %321 : vector<8x128xf32>
    %323 = math.tanh %322 : vector<8x128xf32>
    %324 = arith.mulf %319, %323 : vector<8x128xf32>
    %325 = arith.index_cast %c7_i32 : i32 to index
    %c0_118 = arith.constant 0 : index
    %c0_119 = arith.constant 0 : index
    %326 = vector.load %arg6[%325, %c0_118, %c0_119] : memref<8x8x128xf32, #tpu.memory_space<vmem>>, vector<1x8x128xf32>
    %327 = vector.shape_cast %326 : vector<1x8x128xf32> to vector<8x128xf32>
    %328 = vector.shape_cast %324 : vector<8x128xf32> to vector<1x8x128xf32>
    tpu.vector_store %arg6[%325, %c0_118, %c0_119], %328 {strides = array<i32>} : memref<8x8x128xf32, #tpu.memory_space<vmem>>, vector<1x8x128xf32>,
    %c8_i32 = arith.constant 8 : i32
    %c0_120 = arith.constant 0 : index
    %c0_121 = arith.constant 0 : index
    %329 = vector.load %arg9[%c0_120, %c0_121] : memref<8x128xf32, #tpu.memory_space<vmem>>, vector<8x128xf32>
    tpu.vector_store %arg9[%c0_120, %c0_121], %324 {strides = array<i32>} : memref<8x128xf32, #tpu.memory_space<vmem>>, vector<8x128xf32>,
    %c0_122 = arith.constant 0 : index
    %c0_123 = arith.constant 0 : index
    %330 = vector.load %arg10[%c0_122, %c0_123] : memref<8x128xf32, #tpu.memory_space<vmem>>, vector<8x128xf32>
    tpu.vector_store %arg10[%c0_122, %c0_123], %322 {strides = array<i32>} : memref<8x128xf32, #tpu.memory_space<vmem>>, vector<8x128xf32>,
    %c0_i32_124 = arith.constant 0 : i32
    %331 = arith.cmpi eq, %arg1, %c0_i32_124 : i32
    %332 = arith.extui %331 : i1 to i32
    %c0_i32_125 = arith.constant 0 : i32
    %333 = arith.cmpi ne, %332, %c0_i32_125 : i32
    scf.if %333 {
      %c0_126 = arith.constant 0 : index
      %c0_127 = arith.constant 0 : index
      %334 = vector.load %arg7[%c0_126, %c0_127] : memref<8x128xf32, #tpu.memory_space<vmem>>, vector<8x128xf32>
      tpu.vector_store %arg7[%c0_126, %c0_127], %322 {strides = array<i32>} : memref<8x128xf32, #tpu.memory_space<vmem>>, vector<8x128xf32>,
    } else {
    }
    return
  }
  func.func @transform_0(%arg0: i32, %arg1: i32) -> (i32, i32, i32) {
    %c0_i32 = arith.constant 0 : i32
    %c0_i32_0 = arith.constant 0 : i32
    return %arg1, %arg0, %c0_i32 : i32, i32, i32
  }
  func.func @transform_2(%arg0: i32, %arg1: i32) -> (i32, i32) {
    %c0_i32 = arith.constant 0 : i32
    %c0_i32_0 = arith.constant 0 : i32
    return %arg0, %c0_i32 : i32, i32
  }
  func.func @transform_3(%arg0: i32, %arg1: i32) -> (i32, i32) {
    %c0_i32 = arith.constant 0 : i32
    %c0_i32_0 = arith.constant 0 : i32
    return %arg0, %c0_i32 : i32, i32
  }
  func.func @transform_4(%arg0: i32, %arg1: i32) -> (i32, i32, i32) {
    %c0_i32 = arith.constant 0 : i32
    %c0_i32_0 = arith.constant 0 : i32
    return %arg1, %arg0, %c0_i32 : i32, i32, i32
  }
  func.func @transform_5(%arg0: i32, %arg1: i32) -> (i32, i32) {
    %c0_i32 = arith.constant 0 : i32
    %c0_i32_0 = arith.constant 0 : i32
    return %arg0, %c0_i32 : i32, i32
  }
}

</mosaic_0001>

<bundles_post_ra>
// kernel: tpu_custom_call.1
= control target key start
LH: loop header
LB: loop body
LE: loop exit
PB: predicated region body
PF: predicated region fallthrough
CT: control target
= control target key end

     0   :  { %11 = vsyncpa [#allocation7], 0  ;;  %s2737_s0 = inlined_call_operand.hbm [shape: f32[8,8,512], index: 0, kind: input, shape index: {}]   ;;  %s2738_s1 = inlined_call_operand.hbm [shape: f32[128,512], index: 1, kind: input, shape index: {}]   ;;  %s2739_s2 = inlined_call_operand.hbm [shape: f32[8,128], index: 2, kind: input, shape index: {}]   ;;  %s2740_s3 = inlined_call_operand.vmem [shape: f32[8,128], index: 3, kind: input, shape index: {}]   ;;  %s2741_s4 = inlined_call_operand.hbm [shape: f32[8,8,128], index: 4, kind: output, shape index: {0}]   ;;  %s2742_s5 = inlined_call_operand.hbm [shape: f32[8,128], index: 5, kind: output, shape index: {1}]  }
   0x1   :  { %12 = vsyncpa [#allocation10], 0 }
   0x2   :  { %13 = vsyncpa [#allocation8], 0 }
   0x3   :  { %14 = vsyncpa [#allocation13], 0  ;;  %s2267_s18 = smov [#allocation6]   ;;  %s2147_s22 = scalar_lea.hbm %s2737_s0, 4096 }
   0x4   :  { %s20_s19 = sshll.u32 %s2267_s18, 4  ;;  %p2148_p0 = scmp.ne.s32.totalorder %s2737_s0, %s2147_s22  ;;  %s21_s19 = int_to_ptr.vmem [resolvable:$true] %s20_s19 }
   0x5   :  { %p2151_p1 = scmp.lt.u32.totalorder %s2147_s22, %s2737_s0 }
   0x7   :  { %p2153_p2 = pnand %p2151_p1, %p2148_p0 }
   0x9   :  { %2156 = shalt.err (!%p2153_p2)
}
   0xa   :  { %s2157_s27 = scalar_lea.vmem %s21_s19, 4096  ;;  %p2162_p4 = scmp.lt.s32.totalorder %s21_s19, %s21_s19 }
   0xb   :  { %p2158_p3 = scmp.ne.s32.totalorder %s21_s19, %s2157_s27  ;;  %p2163_p5 = scmp.lt.s32.totalorder %s2157_s27, %s2157_s27 }
   0xd   :  { %p2164_p6 = por %p2163_p5, %p2162_p4 }
   0xf   :  { %p2165_p7 = pnand %p2164_p6, %p2158_p3 }
  0x11   :  { %2168 = shalt.err (!%p2165_p7)
}
  0x12   :  { %s2268_s28 = smov 512   ;;  %s2269_s29 = smov 32  }
  0x13   :  { %26 = dma.hbm_to_vmem [thread:$0]  %s2737_s0, 4096, %s21_s19, [#allocation7], %s2268_s28, %s2268_s28, %s2269_s29  }
  0x14   :  { %s2270_s7 = smov [#allocation9]   ;;  %s2169_s11 = scalar_lea.hbm %s2739_s2, 128 }
  0x15   :  { %s33_s8 = sshll.u32 %s2270_s7, 4  ;;  %p2170_p8 = scmp.ne.s32.totalorder %s2739_s2, %s2169_s11  ;;  %s34_s8 = int_to_ptr.vmem [resolvable:$true] %s33_s8 }
  0x16   :  { %p2173_p9 = scmp.lt.u32.totalorder %s2169_s11, %s2739_s2 }
  0x18   :  { %p2175_p10 = pnand %p2173_p9, %p2170_p8 }
  0x1a   :  { %2178 = shalt.err (!%p2175_p10)
}
  0x1b   :  { %s2179_s16 = scalar_lea.vmem %s34_s8, 128  ;;  %p2184_p12 = scmp.lt.s32.totalorder %s34_s8, %s34_s8 }
  0x1c   :  { %p2180_p11 = scmp.ne.s32.totalorder %s34_s8, %s2179_s16  ;;  %p2185_p13 = scmp.lt.s32.totalorder %s2179_s16, %s2179_s16 }
  0x1e   :  { %p2186_p0 = por %p2185_p13, %p2184_p12 }
  0x20   :  { %p2187_p1 = pnand %p2186_p0, %p2180_p11 }
  0x22   :  { %2190 = shalt.err (!%p2187_p1)
}
  0x23   :  { %36 = dma.hbm_to_vmem [thread:$0]  %s2739_s2, 128, %s34_s8, [#allocation10]  }
  0x24   :  { %2257 = dma.done.wait [#allocation7], 4096  }
  0x25   :  { %2258 = vsyncadd [#allocation7], 4294963200 }
  0x26   :  { %2259 = dma.done.wait [#allocation10], 128  }
  0x27   :  { %2260 = vsyncadd [#allocation10], 4294967168  ;;  %s2271_s18 = smov [#allocation2]   ;;  %s2191_s22 = scalar_lea.hbm %s2738_s1, 8192 }
  0x28   :  { %s56_s19 = sshll.u32 %s2271_s18, 4  ;;  %p2192_p2 = scmp.ne.s32.totalorder %s2738_s1, %s2191_s22  ;;  %s57_s19 = int_to_ptr.vmem [resolvable:$true] %s56_s19 }
  0x29   :  { %p2195_p3 = scmp.lt.u32.totalorder %s2191_s22, %s2738_s1 }
  0x2b   :  { %p2197_p4 = pnand %p2195_p3, %p2192_p2 }
  0x2d   :  { %2200 = shalt.err (!%p2197_p4)  }
  0x2e   :  { %s2201_s2 = scalar_lea.vmem %s57_s19, 8192  ;;  %p2206_p6 = scmp.lt.s32.totalorder %s57_s19, %s57_s19 }
  0x2f   :  { %p2202_p5 = scmp.ne.s32.totalorder %s57_s19, %s2201_s2  ;;  %p2207_p7 = scmp.lt.s32.totalorder %s2201_s2, %s2201_s2 }
  0x31   :  { %p2208_p8 = por %p2207_p7, %p2206_p6 }
  0x33   :  { %p2209_p9 = pnand %p2208_p8, %p2202_p5 }
  0x35   :  { %2212 = shalt.err (!%p2209_p9)  }
  0x36   :  { %59 = dma.hbm_to_vmem [thread:$0]  %s2738_s1, 8192, %s57_s19, [#allocation5]  ;;  %v2343_v0 = vld [vmem:[#allocation9] sm:$0xff] }
  0x37   :  { %v2348_v1 = vld [vmem:[%s2740_s3] sm:$0xff] }
  0x38   :  { %2261 = dma.done.wait [#allocation5], 8192 }
  0x39   :  { %2262 = vsyncadd [#allocation5], 4294959104  ;;  %v2272_v2 = vmov 0.0   ;;  %v69_v3 = vld [vmem:[#allocation2 + $0x8] sm:$0xff]  ;;  %v68_v5 = vld [vmem:[#allocation2] sm:$0xff]  ;;  %s2273_s1 = smov [#allocation12]  }
  0x3a   :  { %202 = vmatprep.mubr.f32.mxu0 %v2272_v2  ;;  %273 = vmatprep.mubr.f32.mxu1 %v2272_v2  ;;  %v73_v4 = vld [vmem:[#allocation2 + $0x28] sm:$0xff]  ;;  %v72_v7 = vld [vmem:[#allocation2 + $0x20] sm:$0xff]  ;;  %v71_v14 = vld [vmem:[#allocation2 + $0x18] sm:$0xff]  ;;  %s1524_s3 = sshll.u32 %s2273_s1, 4  ;;  %s1525_s3 = int_to_ptr.vmem [resolvable:$true] %s1524_s3 }
  0x3b   :  { %v2352_v6 = vpack.c.bf16 %v73_v4, %v69_v3  ;;  %v77_v8 = vld [vmem:[#allocation2 + $0x48] sm:$0xff]  ;;  %v2354_v10 = vpack.c.bf16 %v72_v7, %v68_v5  ;;  %v76_v12 = vld [vmem:[#allocation2 + $0x40] sm:$0xff]  ;;  %v75_v15 = vld [vmem:[#allocation2 + $0x38] sm:$0xff]  ;;  %s2213_s6 = scalar_lea.vmem %s1525_s3, 128  ;;  %p2218_p11 = scmp.lt.s32.totalorder %s1525_s3, %s1525_s3 }
  0x3c   :  { %v81_v9 = vld [vmem:[#allocation2 + $0x68] sm:$0xff]  ;;  %v80_v13 = vld [vmem:[#allocation2 + $0x60] sm:$0xff]  ;;  %v70_v16 = vld [vmem:[#allocation2 + $0x10] sm:$0xff]  ;;  %v2362_v19 = vpack.c.bf16 %v75_v15, %v71_v14  ;;  %p2214_p10 = scmp.ne.s32.totalorder %s1525_s3, %s2213_s6  ;;  %p2219_p12 = scmp.lt.s32.totalorder %s2213_s6, %s2213_s6 }
  0x3d   :  { %v2356_v11 = vpack.c.bf16 %v81_v9, %v77_v8  ;;  %1546 = vmatprep.subr.bf16.mxu0 %v2352_v6  ;;  %v74_v17 = vld [vmem:[#allocation2 + $0x30] sm:$0xff]  ;;  %v2360_v18 = vpack.c.bf16 %v80_v13, %v76_v12  ;;  %v85_v21 = vld [vmem:[#allocation2 + $0x88] sm:$0xff]  ;;  %v84_v23 = vld [vmem:[#allocation2 + $0x80] sm:$0xff] }
  0x3e   :  { %1548 = vmatpush1.bf16.msra.mxu0 %v2354_v10  ;;  %v2364_v20 = vpack.c.bf16 %v74_v17, %v70_v16  ;;  %v89_v22 = vld [vmem:[#allocation2 + $0xa8] sm:$0xff]  ;;  %v88_v25 = vld [vmem:[#allocation2 + $0xa0] sm:$0xff]  ;;  %v79_v26 = vld [vmem:[#allocation2 + $0x58] sm:$0xff]  ;;  %1578 = vmatprep.subr.bf16.mxu1 %v2362_v19  ;;  %p2220_p13 = por %p2219_p12, %p2218_p11 }
  0x3f   :  { %1550 = vmatprep.subr.bf16.mxu0 %v2356_v11  ;;  %v2367_v24 = vpack.c.bf16 %v89_v22, %v85_v21  ;;  %v83_v27 = vld [vmem:[#allocation2 + $0x78] sm:$0xff]  ;;  %v78_v29 = vld [vmem:[#allocation2 + $0x50] sm:$0xff]  ;;  %v93_v31 = vld [vmem:[#allocation2 + $0xc8] sm:$0xff]  ;;  %v2376_v34 = vpack.c.bf16 %v88_v25, %v84_v23 }
  0x40   :  { %v2370_v28 = vpack.c.bf16 %v83_v27, %v79_v26  ;;  %v82_v30 = vld [vmem:[#allocation2 + $0x70] sm:$0xff]  ;;  %1580 = vmatpush1.bf16.msra.mxu1 %v2364_v20  ;;  %v97_v33 = vld [vmem:[#allocation2 + $0xe8] sm:$0xff]  ;;  %v87_v35 = vld [vmem:[#allocation2 + $0x98] sm:$0xff]  ;;  %p2221_p0 = pnand %p2220_p13, %p2214_p10 }
  0x41   :  { %v2373_v32 = vpack.c.bf16 %v82_v30, %v78_v29  ;;  %v91_v36 = vld [vmem:[#allocation2 + $0xb8] sm:$0xff]  ;;  %v86_v37 = vld [vmem:[#allocation2 + $0x90] sm:$0xff]  ;;  %v2380_v38 = vpack.c.bf16 %v97_v33, %v93_v31  ;;  %v92_v39 = vld [vmem:[#allocation2 + $0xc0] sm:$0xff] }
  0x42   :  { %1552 = vmatpush1.bf16.msra.mxu0 %v2360_v18  ;;  %1582 = vmatprep.subr.bf16.mxu1 %v2370_v28  ;;  %v96_v40 = vld [vmem:[#allocation2 + $0xe0] sm:$0xff]  ;;  %v2382_v41 = vpack.c.bf16 %v91_v36, %v87_v35  ;;  %v90_v42 = vld [vmem:[#allocation2 + $0xb0] sm:$0xff]  ;;  %v101_v43 = vld [vmem:[#allocation2 + $0x108] sm:$0xff] }
  0x43   :  { %1554 = vmatprep.subr.bf16.mxu0 %v2367_v24  ;;  %v105_v44 = vld [vmem:[#allocation2 + $0x128] sm:$0xff]  ;;  %v95_v45 = vld [vmem:[#allocation2 + $0xd8] sm:$0xff]  ;;  %v2385_v46 = vpack.c.bf16 %v90_v42, %v86_v37  ;;  %v2388_v48 = vpack.c.bf16 %v96_v40, %v92_v39  ;;  %v100_v49 = vld [vmem:[#allocation2 + $0x100] sm:$0xff] }
  0x44   :  { %1584 = vmatpush1.bf16.msra.mxu1 %v2373_v32  ;;  %v99_v47 = vld [vmem:[#allocation2 + $0xf8] sm:$0xff]  ;;  %v94_v51 = vld [vmem:[#allocation2 + $0xd0] sm:$0xff]  ;;  %v2394_v53 = vpack.c.bf16 %v105_v44, %v101_v43  ;;  %v104_v54 = vld [vmem:[#allocation2 + $0x120] sm:$0xff] }
  0x45   :  { %1586 = vmatprep.subr.bf16.mxu1 %v2382_v41  ;;  %v2391_v50 = vpack.c.bf16 %v99_v47, %v95_v45  ;;  %v98_v52 = vld [vmem:[#allocation2 + $0xf0] sm:$0xff]  ;;  %v103_v55 = vld [vmem:[#allocation2 + $0x118] sm:$0xff]  ;;  %v109_v57 = vld [vmem:[#allocation2 + $0x148] sm:$0xff]  ;;  %v2400_v60 = vpack.c.bf16 %v104_v54, %v100_v49 }
  0x46   :  { %1556 = vmatpush1.bf16.msra.mxu0 %v2376_v34  ;;  %v107_v56 = vld [vmem:[#allocation2 + $0x138] sm:$0xff]  ;;  %v113_v58 = vld [vmem:[#allocation2 + $0x168] sm:$0xff]  ;;  %v2397_v59 = vpack.c.bf16 %v98_v52, %v94_v51  ;;  %v108_v61 = vld [vmem:[#allocation2 + $0x140] sm:$0xff] }
  0x47   :  { %1558 = vmatprep.subr.bf16.mxu0 %v2380_v38  ;;  %v2403_v62 = vpack.c.bf16 %v107_v56, %v103_v55  ;;  %v102_v63 = vld [vmem:[#allocation2 + $0x110] sm:$0xff]  ;;  %v2406_v4 = vpack.c.bf16 %v113_v58, %v109_v57  ;;  %v112_v5 = vld [vmem:[#allocation2 + $0x160] sm:$0xff]  ;;  %v111_v7 = vld [vmem:[#allocation2 + $0x158] sm:$0xff] }
  0x48   :  { %1588 = vmatpush1.bf16.msra.mxu1 %v2385_v46  ;;  %v106_v3 = vld [vmem:[#allocation2 + $0x130] sm:$0xff]  ;;  %v115_v8 = vld [vmem:[#allocation2 + $0x178] sm:$0xff]  ;;  %v117_v9 = vld [vmem:[#allocation2 + $0x188] sm:$0xff]  ;;  %v2412_v14 = vpack.c.bf16 %v112_v5, %v108_v61 }
  0x49   :  { %1590 = vmatprep.subr.bf16.mxu1 %v2391_v50  ;;  %v121_v12 = vld [vmem:[#allocation2 + $0x1a8] sm:$0xff]  ;;  %v2409_v13 = vpack.c.bf16 %v106_v3, %v102_v63  ;;  %v116_v15 = vld [vmem:[#allocation2 + $0x180] sm:$0xff]  ;;  %v2415_v16 = vpack.c.bf16 %v115_v8, %v111_v7  ;;  %v110_v17 = vld [vmem:[#allocation2 + $0x150] sm:$0xff] }
  0x4a   :  { %1560 = vmatpush1.bf16.msra.mxu0 %v2388_v48  ;;  %v114_v21 = vld [vmem:[#allocation2 + $0x170] sm:$0xff]  ;;  %v2418_v22 = vpack.c.bf16 %v121_v12, %v117_v9  ;;  %v120_v23 = vld [vmem:[#allocation2 + $0x1a0] sm:$0xff]  ;;  %v119_v25 = vld [vmem:[#allocation2 + $0x198] sm:$0xff] }
  0x4b   :  { %1562 = vmatprep.subr.bf16.mxu0 %v2394_v53  ;;  %v123_v26 = vld [vmem:[#allocation2 + $0x1b8] sm:$0xff]  ;;  %v125_v27 = vld [vmem:[#allocation2 + $0x1c8] sm:$0xff]  ;;  %v2421_v30 = vpack.c.bf16 %v114_v21, %v110_v17  ;;  %v2424_v31 = vpack.c.bf16 %v120_v23, %v116_v15  ;;  %v124_v33 = vld [vmem:[#allocation2 + $0x1c0] sm:$0xff] }
  0x4c   :  { %1592 = vmatpush1.bf16.msra.mxu1 %v2397_v59  ;;  %v129_v29 = vld [vmem:[#allocation2 + $0x1e8] sm:$0xff]  ;;  %v2427_v35 = vpack.c.bf16 %v123_v26, %v119_v25  ;;  %v118_v36 = vld [vmem:[#allocation2 + $0x190] sm:$0xff]  ;;  %v128_v40 = vld [vmem:[#allocation2 + $0x1e0] sm:$0xff] }
  0x4d   :  { %1594 = vmatprep.subr.bf16.mxu1 %v2403_v62  ;;  %v122_v37 = vld [vmem:[#allocation2 + $0x1b0] sm:$0xff]  ;;  %v2430_v39 = vpack.c.bf16 %v129_v29, %v125_v27  ;;  %v127_v42 = vld [vmem:[#allocation2 + $0x1d8] sm:$0xff]  ;;  %v2436_v45 = vpack.c.bf16 %v128_v40, %v124_v33  ;;  %v135_v54 = vld [vmem:[#allocation6 + $0x8] sm:$0xff] }
  0x4e   :  { %1564 = vmatpush1.bf16.msra.mxu0 %v2400_v60  ;;  %v131_v43 = vld [vmem:[#allocation2 + $0x1f8] sm:$0xff]  ;;  %v2433_v44 = vpack.c.bf16 %v122_v37, %v118_v36  ;;  %v126_v49 = vld [vmem:[#allocation2 + $0x1d0] sm:$0xff] }
  0x4f   :  { %1566 = vmatprep.subr.bf16.mxu0 %v2406_v4  ;;  %v2439_v47 = vpack.c.bf16 %v131_v43, %v127_v42  ;;  %v130_v51 = vld [vmem:[#allocation2 + $0x1f0] sm:$0xff]  ;;  %v137_v9 = vld [vmem:[#allocation6 + $0x18] sm:$0xff] }
  0x50   :  { %1596 = vmatpush1.bf16.msra.mxu1 %v2409_v13  ;;  %v2443_v52 = vpack.c.bf16 %v130_v51, %v126_v49  ;;  %v136_v58 = vld [vmem:[#allocation6 + $0x10] sm:$0xff] }
  0x51   :  { %1598 = vmatprep.subr.bf16.mxu1 %v2415_v16 }
  0x52   :  { %1568 = vmatpush1.bf16.msra.mxu0 %v2412_v14 }
  0x53   :  { %1570 = vmatprep.subr.bf16.mxu0 %v2418_v22 }
  0x54   :  { %1600 = vmatpush1.bf16.msra.mxu1 %v2421_v30 }
  0x55   :  { %1602 = vmatprep.subr.bf16.mxu1 %v2427_v35 }
  0x56   :  { %1572 = vmatpush1.bf16.msra.mxu0 %v2424_v31 }
  0x57   :  { %1574 = vmatprep.subr.bf16.mxu0 %v2430_v39 }
  0x58   :  { %1604 = vmatpush1.bf16.msra.mxu1 %v2433_v44 }
  0x59   :  { %1606 = vmatprep.subr.bf16.mxu1 %v2439_v47 }
  0x5a   :  { %1576 = vmatpush1.bf16.msra.mxu0 %v2436_v45 }
  0x5b   :  { %1610 = vmatprep.subr.bf16.mxu0 %v2352_v6 }
  0x5c   :  { %1608 = vmatpush1.bf16.msra.mxu1 %v2443_v52 }
  0x5d   :  { %203 = vmatmul.mubr.f32.vlgmr.msra.gmra.mrb[0].mxu0 %v2343_v0  ;;  %1642 = vmatprep.subr.bf16.mxu1 %v2362_v19 }
  0x5e   :  { %1612 = vmatpush1.bf16.msra.mxu0 %v2354_v10  ;;  %372 = vmatprep.mubr.f32.mxu0 %v2272_v2 }
  0x5f   :  { %1614 = vmatprep.subr.bf16.mxu0 %v2356_v11  ;;  %274 = vmatmul.mubr.f32.vlgmr.msra.gmra.mrb[0].mxu1 %v2343_v0  ;;  %v134_v0 = vld [vmem:[#allocation6] sm:$0xff] }
  0x60   :  { %1644 = vmatpush1.bf16.msra.mxu1 %v2364_v20  ;;  %443 = vmatprep.mubr.f32.mxu1 %v2272_v2 }
  0x61   :  { %1646 = vmatprep.subr.bf16.mxu1 %v2370_v28 }
  0x62   :  { %1616 = vmatpush1.bf16.msra.mxu0 %v2360_v18 }
  0x63   :  { %1618 = vmatprep.subr.bf16.mxu0 %v2367_v24 }
  0x64   :  { %1648 = vmatpush1.bf16.msra.mxu1 %v2373_v32 }
  0x65   :  { %1650 = vmatprep.subr.bf16.mxu1 %v2382_v41 }
  0x66   :  { %1620 = vmatpush1.bf16.msra.mxu0 %v2376_v34 }
  0x67   :  { %1622 = vmatprep.subr.bf16.mxu0 %v2380_v38 }
  0x68   :  { %1652 = vmatpush1.bf16.msra.mxu1 %v2385_v46 }
  0x69   :  { %1654 = vmatprep.subr.bf16.mxu1 %v2391_v50 }
  0x6a   :  { %1624 = vmatpush1.bf16.msra.mxu0 %v2388_v48 }
  0x6b   :  { %1626 = vmatprep.subr.bf16.mxu0 %v2394_v53 }
  0x6c   :  { %1656 = vmatpush1.bf16.msra.mxu1 %v2397_v59 }
  0x6d   :  { %1658 = vmatprep.subr.bf16.mxu1 %v2403_v62 }
  0x6e   :  { %1628 = vmatpush1.bf16.msra.mxu0 %v2400_v60 }
  0x6f   :  { %1630 = vmatprep.subr.bf16.mxu0 %v2406_v4 }
  0x70   :  { %1660 = vmatpush1.bf16.msra.mxu1 %v2409_v13 }
  0x71   :  { %1662 = vmatprep.subr.bf16.mxu1 %v2415_v16 }
  0x72   :  { %1632 = vmatpush1.bf16.msra.mxu0 %v2412_v14 }
  0x73   :  { %1634 = vmatprep.subr.bf16.mxu0 %v2418_v22 }
  0x74   :  { %1664 = vmatpush1.bf16.msra.mxu1 %v2421_v30 }
  0x75   :  { %1666 = vmatprep.subr.bf16.mxu1 %v2427_v35 }
  0x76   :  { %1636 = vmatpush1.bf16.msra.mxu0 %v2424_v31 }
  0x77   :  { %1638 = vmatprep.subr.bf16.mxu0 %v2430_v39 }
  0x78   :  { %1668 = vmatpush1.bf16.msra.mxu1 %v2433_v44 }
  0x79   :  { %1670 = vmatprep.subr.bf16.mxu1 %v2439_v47 }
  0x7a   :  { %1640 = vmatpush1.bf16.msra.mxu0 %v2436_v45 }
  0x7b   :  { %1674 = vmatprep.subr.bf16.mxu0 %v2352_v6 }
  0x7c   :  { %1672 = vmatpush1.bf16.msra.mxu1 %v2443_v52 }
  0x7d   :  { %1706 = vmatprep.subr.bf16.mxu1 %v2362_v19 }
 0x130   :  { %v204_v55 = vpop.f32.mrb[0].mxu0 }
 0x131   :  { %v280_v56 = vadd.f32 %v204_v55, %v134_v0  ;;  %v206_v57 = vpop.f32.mrb[1].mxu0  ;;  %v305_v0 = vld [vmem:[#allocation6 + $0x28] sm:$0xff] }
 0x132   :  { %v281_v61 = vadd.f32 %v206_v57, %v135_v54  ;;  %v275_v3 = vpop.f32.mrb[0].mxu1 }
 0x133   :  { %v284_v63 = vmul.f32 0.5, %v280_v56  ;;  %v282_v7 = vadd.f32 %v275_v3, %v136_v58  ;;  %v277_v8 = vpop.f32.mrb[1].mxu1 }
 0x134   :  { %v288_v5 = vmul.f32 0.5, %v281_v61  ;;  %v283_v12 = vadd.f32 %v277_v8, %v137_v9  ;;  %v306_v61 = vld [vmem:[#allocation6 + $0x30] sm:$0xff]  ;;  %v307_v8 = vld [vmem:[#allocation6 + $0x38] sm:$0xff] }
 0x135   :  { %2067 = vtanh.f32 %v284_v63 }
 0x136   :  { %2069 = vtanh.f32 %v288_v5  ;;  %v293_v15 = vmul.f32 0.5, %v283_v12 }
 0x137   :  { %2071 = vtanh.f32 %v282_v7 }
 0x138   :  { %2073 = vtanh.f32 %v293_v15 }
 0x13f   :  { %v2068_v17 = vpop.eup %2067 }
 0x140   :  { %v2070_v21 = vpop.eup %2069  ;;  %v286_v23 = vmul.f32 0.5, %v2068_v17 }
 0x141   :  { %v2072_v25 = vpop.eup %2071  ;;  %v290_v26 = vmul.f32 0.5, %v2070_v21 }
 0x142   :  { %v287_v27 = vadd.f32 0.5, %v286_v23  ;;  %v2074_v40 = vpop.eup %2073 }
 0x143   :  { %v291_v29 = vadd.f32 0.5, %v290_v26  ;;  %v295_v42 = vmul.f32 0.5, %v2074_v40 }
 0x144   :  { %v298_v33 = vmul.f32 %v2072_v25, %v287_v27 }
 0x145   :  { %v297_v36 = vmul.f32 %v291_v29, %v2348_v1  ;;  %v296_v43 = vadd.f32 0.5, %v295_v42  ;;  %v304_v1 = vld [vmem:[#allocation6 + $0x20] sm:$0xff] }
 0x147   :  { %v2487_v37 = vadd.f32 %v298_v33, %v297_v36 }
 0x149   :  { %2075 = vtanh.f32 %v2487_v37 }
 0x153   :  { %v2076_v49 = vpop.eup %2075 }
 0x154   :  { %v301_v51 = vmul.f32 %v2076_v49, %v296_v43 }
 0x156   :  { %302 = vst [vmem:[#allocation11] sm:$0xff] %v301_v51  ;;  %373 = vmatmul.mubr.f32.vlgmr.msra.gmra.mrb[2].mxu0 %v301_v51  ;;  %444 = vmatmul.mubr.f32.vlgmr.msra.gmra.mrb[2].mxu1 %v301_v51 }
 0x157   :  { %1676 = vmatpush1.bf16.msra.mxu0 %v2354_v10  ;;  %1708 = vmatpush1.bf16.msra.mxu1 %v2364_v20 }
 0x158   :  { %1678 = vmatprep.subr.bf16.mxu0 %v2356_v11  ;;  %1710 = vmatprep.subr.bf16.mxu1 %v2370_v28 }
 0x159   :  { %543 = vmatprep.mubr.f32.mxu0 %v2272_v2  ;;  %614 = vmatprep.mubr.f32.mxu1 %v2272_v2 }
 0x15b   :  { %1680 = vmatpush1.bf16.msra.mxu0 %v2360_v18  ;;  %1712 = vmatpush1.bf16.msra.mxu1 %v2373_v32 }
 0x15c   :  { %1682 = vmatprep.subr.bf16.mxu0 %v2367_v24  ;;  %1714 = vmatprep.subr.bf16.mxu1 %v2382_v41 }
 0x15f   :  { %1684 = vmatpush1.bf16.msra.mxu0 %v2376_v34  ;;  %1716 = vmatpush1.bf16.msra.mxu1 %v2385_v46 }
 0x160   :  { %1686 = vmatprep.subr.bf16.mxu0 %v2380_v38  ;;  %1718 = vmatprep.subr.bf16.mxu1 %v2391_v50 }
 0x163   :  { %1688 = vmatpush1.bf16.msra.mxu0 %v2388_v48  ;;  %1720 = vmatpush1.bf16.msra.mxu1 %v2397_v59 }
 0x164   :  { %1690 = vmatprep.subr.bf16.mxu0 %v2394_v53  ;;  %1722 = vmatprep.subr.bf16.mxu1 %v2403_v62 }
 0x167   :  { %1692 = vmatpush1.bf16.msra.mxu0 %v2400_v60  ;;  %1724 = vmatpush1.bf16.msra.mxu1 %v2409_v13 }
 0x168   :  { %1694 = vmatprep.subr.bf16.mxu0 %v2406_v4  ;;  %1726 = vmatprep.subr.bf16.mxu1 %v2415_v16 }
 0x16b   :  { %1696 = vmatpush1.bf16.msra.mxu0 %v2412_v14  ;;  %1728 = vmatpush1.bf16.msra.mxu1 %v2421_v30 }
 0x16c   :  { %1698 = vmatprep.subr.bf16.mxu0 %v2418_v22  ;;  %1730 = vmatprep.subr.bf16.mxu1 %v2427_v35 }
 0x16f   :  { %1700 = vmatpush1.bf16.msra.mxu0 %v2424_v31  ;;  %1732 = vmatpush1.bf16.msra.mxu1 %v2433_v44 }
 0x170   :  { %1702 = vmatprep.subr.bf16.mxu0 %v2430_v39  ;;  %1734 = vmatprep.subr.bf16.mxu1 %v2439_v47 }
 0x173   :  { %1704 = vmatpush1.bf16.msra.mxu0 %v2436_v45  ;;  %1736 = vmatpush1.bf16.msra.mxu1 %v2443_v52 }
 0x174   :  { %1738 = vmatprep.subr.bf16.mxu0 %v2352_v6  ;;  %1770 = vmatprep.subr.bf16.mxu1 %v2362_v19 }
 0x229   :  { %v374_v54 = vpop.f32.mrb[2].mxu0  ;;  %v445_v55 = vpop.f32.mrb[2].mxu1 }
 0x22a   :  { %v450_v56 = vadd.f32 %v374_v54, %v304_v1  ;;  %v376_v57 = vpop.f32.mrb[3].mxu0  ;;  %v447_v58 = vpop.f32.mrb[3].mxu1  ;;  %v452_v7 = vadd.f32 %v445_v55, %v306_v61  ;;  %v476_v1 = vld [vmem:[#allocation6 + $0x48] sm:$0xff] }
 0x22b   :  { %v451_v63 = vadd.f32 %v376_v57, %v305_v0  ;;  %v453_v9 = vadd.f32 %v447_v58, %v307_v8  ;;  %v477_v58 = vld [vmem:[#allocation6 + $0x50] sm:$0xff] }
 0x22c   :  { %v454_v3 = vmul.f32 0.5, %v450_v56 }
 0x22d   :  { %v458_v5 = vmul.f32 0.5, %v451_v63  ;;  %v463_v12 = vmul.f32 0.5, %v453_v9 }
 0x22e   :  { %2077 = vtanh.f32 %v454_v3 }
 0x22f   :  { %2079 = vtanh.f32 %v458_v5 }
 0x230   :  { %2081 = vtanh.f32 %v452_v7  ;;  %v478_v7 = vld [vmem:[#allocation6 + $0x58] sm:$0xff] }
 0x231   :  { %2083 = vtanh.f32 %v463_v12 }
 0x238   :  { %v2078_v15 = vpop.eup %2077 }
 0x239   :  { %v2080_v17 = vpop.eup %2079  ;;  %v456_v21 = vmul.f32 0.5, %v2078_v15 }
 0x23a   :  { %v460_v23 = vmul.f32 0.5, %v2080_v17  ;;  %v2082_v26 = vpop.eup %2081 }
 0x23b   :  { %v457_v25 = vadd.f32 0.5, %v456_v21  ;;  %v2084_v40 = vpop.eup %2083 }
 0x23c   :  { %v461_v27 = vadd.f32 0.5, %v460_v23  ;;  %v465_v42 = vmul.f32 0.5, %v2084_v40 }
 0x23d   :  { %v468_v29 = vmul.f32 %v2082_v26, %v457_v25 }
 0x23e   :  { %v467_v33 = vmul.f32 %v461_v27, %v2487_v37  ;;  %v466_v43 = vadd.f32 0.5, %v465_v42  ;;  %v475_v37 = vld [vmem:[#allocation6 + $0x40] sm:$0xff] }
 0x240   :  { %v2525_v36 = vadd.f32 %v468_v29, %v467_v33 }
 0x242   :  { %2085 = vtanh.f32 %v2525_v36 }
 0x24c   :  { %v2086_v49 = vpop.eup %2085 }
 0x24d   :  { %v471_v51 = vmul.f32 %v2086_v49, %v466_v43 }
 0x24f   :  { %473 = vst [vmem:[#allocation11 + $0x8] sm:$0xff] %v471_v51  ;;  %544 = vmatmul.mubr.f32.vlgmr.msra.gmra.mrb[4].mxu0 %v471_v51  ;;  %615 = vmatmul.mubr.f32.vlgmr.msra.gmra.mrb[4].mxu1 %v471_v51 }
 0x250   :  { %1740 = vmatpush1.bf16.msra.mxu0 %v2354_v10  ;;  %1772 = vmatpush1.bf16.msra.mxu1 %v2364_v20 }
 0x251   :  { %1742 = vmatprep.subr.bf16.mxu0 %v2356_v11  ;;  %1774 = vmatprep.subr.bf16.mxu1 %v2370_v28 }
 0x252   :  { %714 = vmatprep.mubr.f32.mxu0 %v2272_v2  ;;  %785 = vmatprep.mubr.f32.mxu1 %v2272_v2 }
 0x254   :  { %1744 = vmatpush1.bf16.msra.mxu0 %v2360_v18  ;;  %1776 = vmatpush1.bf16.msra.mxu1 %v2373_v32 }
 0x255   :  { %1746 = vmatprep.subr.bf16.mxu0 %v2367_v24  ;;  %1778 = vmatprep.subr.bf16.mxu1 %v2382_v41 }
 0x258   :  { %1748 = vmatpush1.bf16.msra.mxu0 %v2376_v34  ;;  %1780 = vmatpush1.bf16.msra.mxu1 %v2385_v46 }
 0x259   :  { %1750 = vmatprep.subr.bf16.mxu0 %v2380_v38  ;;  %1782 = vmatprep.subr.bf16.mxu1 %v2391_v50 }
 0x25c   :  { %1752 = vmatpush1.bf16.msra.mxu0 %v2388_v48  ;;  %1784 = vmatpush1.bf16.msra.mxu1 %v2397_v59 }
 0x25d   :  { %1754 = vmatprep.subr.bf16.mxu0 %v2394_v53  ;;  %1786 = vmatprep.subr.bf16.mxu1 %v2403_v62 }
 0x260   :  { %1756 = vmatpush1.bf16.msra.mxu0 %v2400_v60  ;;  %1788 = vmatpush1.bf16.msra.mxu1 %v2409_v13 }
 0x261   :  { %1758 = vmatprep.subr.bf16.mxu0 %v2406_v4  ;;  %1790 = vmatprep.subr.bf16.mxu1 %v2415_v16 }
 0x264   :  { %1760 = vmatpush1.bf16.msra.mxu0 %v2412_v14  ;;  %1792 = vmatpush1.bf16.msra.mxu1 %v2421_v30 }
 0x265   :  { %1762 = vmatprep.subr.bf16.mxu0 %v2418_v22  ;;  %1794 = vmatprep.subr.bf16.mxu1 %v2427_v35 }
 0x268   :  { %1764 = vmatpush1.bf16.msra.mxu0 %v2424_v31  ;;  %1796 = vmatpush1.bf16.msra.mxu1 %v2433_v44 }
 0x269   :  { %1766 = vmatprep.subr.bf16.mxu0 %v2430_v39  ;;  %1798 = vmatprep.subr.bf16.mxu1 %v2439_v47 }
 0x26c   :  { %1768 = vmatpush1.bf16.msra.mxu0 %v2436_v45  ;;  %1800 = vmatpush1.bf16.msra.mxu1 %v2443_v52 }
 0x26d   :  { %1802 = vmatprep.subr.bf16.mxu0 %v2352_v6  ;;  %1834 = vmatprep.subr.bf16.mxu1 %v2362_v19 }
 0x322   :  { %v545_v0 = vpop.f32.mrb[4].mxu0  ;;  %v616_v54 = vpop.f32.mrb[4].mxu1 }
 0x323   :  { %v621_v55 = vadd.f32 %v545_v0, %v475_v37  ;;  %v547_v56 = vpop.f32.mrb[5].mxu0  ;;  %v618_v57 = vpop.f32.mrb[5].mxu1  ;;  %v623_v5 = vadd.f32 %v616_v54, %v477_v58  ;;  %v647_v37 = vld [vmem:[#allocation6 + $0x68] sm:$0xff] }
 0x324   :  { %v622_v61 = vadd.f32 %v547_v56, %v476_v1  ;;  %v624_v8 = vadd.f32 %v618_v57, %v478_v7  ;;  %v648_v57 = vld [vmem:[#allocation6 + $0x70] sm:$0xff] }
 0x325   :  { %v625_v63 = vmul.f32 0.5, %v621_v55 }
 0x326   :  { %v629_v3 = vmul.f32 0.5, %v622_v61  ;;  %v634_v9 = vmul.f32 0.5, %v624_v8 }
 0x327   :  { %2087 = vtanh.f32 %v625_v63 }
 0x328   :  { %2089 = vtanh.f32 %v629_v3 }
 0x329   :  { %2091 = vtanh.f32 %v623_v5  ;;  %v649_v5 = vld [vmem:[#allocation6 + $0x78] sm:$0xff] }
 0x32a   :  { %2093 = vtanh.f32 %v634_v9 }
 0x331   :  { %v2088_v12 = vpop.eup %2087 }
 0x332   :  { %v2090_v15 = vpop.eup %2089  ;;  %v627_v17 = vmul.f32 0.5, %v2088_v12 }
 0x333   :  { %v631_v21 = vmul.f32 0.5, %v2090_v15  ;;  %v2092_v25 = vpop.eup %2091 }
 0x334   :  { %v628_v23 = vadd.f32 0.5, %v627_v17  ;;  %v2094_v40 = vpop.eup %2093 }
 0x335   :  { %v632_v26 = vadd.f32 0.5, %v631_v21  ;;  %v636_v42 = vmul.f32 0.5, %v2094_v40 }
 0x336   :  { %v639_v27 = vmul.f32 %v2092_v25, %v628_v23 }
 0x337   :  { %v638_v29 = vmul.f32 %v632_v26, %v2525_v36  ;;  %v637_v43 = vadd.f32 0.5, %v636_v42  ;;  %v646_v36 = vld [vmem:[#allocation6 + $0x60] sm:$0xff] }
 0x339   :  { %v2563_v33 = vadd.f32 %v639_v27, %v638_v29 }
 0x33b   :  { %2095 = vtanh.f32 %v2563_v33 }
 0x345   :  { %v2096_v49 = vpop.eup %2095 }
 0x346   :  { %v642_v51 = vmul.f32 %v2096_v49, %v637_v43 }
 0x348   :  { %644 = vst [vmem:[#allocation11 + $0x10] sm:$0xff] %v642_v51  ;;  %715 = vmatmul.mubr.f32.vlgmr.msra.gmra.mrb[6].mxu0 %v642_v51  ;;  %786 = vmatmul.mubr.f32.vlgmr.msra.gmra.mrb[6].mxu1 %v642_v51 }
 0x349   :  { %1804 = vmatpush1.bf16.msra.mxu0 %v2354_v10  ;;  %1836 = vmatpush1.bf16.msra.mxu1 %v2364_v20 }
 0x34a   :  { %1806 = vmatprep.subr.bf16.mxu0 %v2356_v11  ;;  %1838 = vmatprep.subr.bf16.mxu1 %v2370_v28 }
 0x34b   :  { %885 = vmatprep.mubr.f32.mxu0 %v2272_v2  ;;  %956 = vmatprep.mubr.f32.mxu1 %v2272_v2 }
 0x34d   :  { %1808 = vmatpush1.bf16.msra.mxu0 %v2360_v18  ;;  %1840 = vmatpush1.bf16.msra.mxu1 %v2373_v32 }
 0x34e   :  { %1810 = vmatprep.subr.bf16.mxu0 %v2367_v24  ;;  %1842 = vmatprep.subr.bf16.mxu1 %v2382_v41 }
 0x351   :  { %1812 = vmatpush1.bf16.msra.mxu0 %v2376_v34  ;;  %1844 = vmatpush1.bf16.msra.mxu1 %v2385_v46 }
 0x352   :  { %1814 = vmatprep.subr.bf16.mxu0 %v2380_v38  ;;  %1846 = vmatprep.subr.bf16.mxu1 %v2391_v50 }
 0x355   :  { %1816 = vmatpush1.bf16.msra.mxu0 %v2388_v48  ;;  %1848 = vmatpush1.bf16.msra.mxu1 %v2397_v59 }
 0x356   :  { %1818 = vmatprep.subr.bf16.mxu0 %v2394_v53  ;;  %1850 = vmatprep.subr.bf16.mxu1 %v2403_v62 }
 0x359   :  { %1820 = vmatpush1.bf16.msra.mxu0 %v2400_v60  ;;  %1852 = vmatpush1.bf16.msra.mxu1 %v2409_v13 }
 0x35a   :  { %1822 = vmatprep.subr.bf16.mxu0 %v2406_v4  ;;  %1854 = vmatprep.subr.bf16.mxu1 %v2415_v16 }
 0x35d   :  { %1824 = vmatpush1.bf16.msra.mxu0 %v2412_v14  ;;  %1856 = vmatpush1.bf16.msra.mxu1 %v2421_v30 }
 0x35e   :  { %1826 = vmatprep.subr.bf16.mxu0 %v2418_v22  ;;  %1858 = vmatprep.subr.bf16.mxu1 %v2427_v35 }
 0x361   :  { %1828 = vmatpush1.bf16.msra.mxu0 %v2424_v31  ;;  %1860 = vmatpush1.bf16.msra.mxu1 %v2433_v44 }
 0x362   :  { %1830 = vmatprep.subr.bf16.mxu0 %v2430_v39  ;;  %1862 = vmatprep.subr.bf16.mxu1 %v2439_v47 }
 0x365   :  { %1832 = vmatpush1.bf16.msra.mxu0 %v2436_v45  ;;  %1864 = vmatpush1.bf16.msra.mxu1 %v2443_v52 }
 0x366   :  { %1866 = vmatprep.subr.bf16.mxu0 %v2352_v6  ;;  %1898 = vmatprep.subr.bf16.mxu1 %v2362_v19 }
 0x41b   :  { %v716_v1 = vpop.f32.mrb[6].mxu0  ;;  %v787_v0 = vpop.f32.mrb[6].mxu1 }
 0x41c   :  { %v792_v54 = vadd.f32 %v716_v1, %v646_v36  ;;  %v718_v55 = vpop.f32.mrb[7].mxu0  ;;  %v789_v56 = vpop.f32.mrb[7].mxu1  ;;  %v794_v3 = vadd.f32 %v787_v0, %v648_v57  ;;  %v818_v36 = vld [vmem:[#allocation6 + $0x88] sm:$0xff] }
 0x41d   :  { %v793_v58 = vadd.f32 %v718_v55, %v647_v37  ;;  %v795_v7 = vadd.f32 %v789_v56, %v649_v5  ;;  %v819_v56 = vld [vmem:[#allocation6 + $0x90] sm:$0xff] }
 0x41e   :  { %v796_v61 = vmul.f32 0.5, %v792_v54 }
 0x41f   :  { %v800_v63 = vmul.f32 0.5, %v793_v58  ;;  %v805_v8 = vmul.f32 0.5, %v795_v7 }
 0x420   :  { %2097 = vtanh.f32 %v796_v61 }
 0x421   :  { %2099 = vtanh.f32 %v800_v63 }
 0x422   :  { %2101 = vtanh.f32 %v794_v3  ;;  %v820_v3 = vld [vmem:[#allocation6 + $0x98] sm:$0xff] }
 0x423   :  { %2103 = vtanh.f32 %v805_v8 }
 0x42a   :  { %v2098_v9 = vpop.eup %2097 }
 0x42b   :  { %v2100_v12 = vpop.eup %2099  ;;  %v798_v15 = vmul.f32 0.5, %v2098_v9 }
 0x42c   :  { %v802_v17 = vmul.f32 0.5, %v2100_v12  ;;  %v2102_v23 = vpop.eup %2101 }
 0x42d   :  { %v799_v21 = vadd.f32 0.5, %v798_v15  ;;  %v2104_v40 = vpop.eup %2103 }
 0x42e   :  { %v803_v25 = vadd.f32 0.5, %v802_v17  ;;  %v807_v42 = vmul.f32 0.5, %v2104_v40 }
 0x42f   :  { %v810_v26 = vmul.f32 %v2102_v23, %v799_v21 }
 0x430   :  { %v809_v27 = vmul.f32 %v803_v25, %v2563_v33  ;;  %v808_v43 = vadd.f32 0.5, %v807_v42  ;;  %v817_v33 = vld [vmem:[#allocation6 + $0x80] sm:$0xff] }
 0x432   :  { %v2601_v29 = vadd.f32 %v810_v26, %v809_v27 }
 0x434   :  { %2105 = vtanh.f32 %v2601_v29 }
 0x43e   :  { %v2106_v49 = vpop.eup %2105 }
 0x43f   :  { %v813_v51 = vmul.f32 %v2106_v49, %v808_v43 }
 0x441   :  { %815 = vst [vmem:[#allocation11 + $0x18] sm:$0xff] %v813_v51  ;;  %886 = vmatmul.mubr.f32.vlgmr.msra.gmra.mrb[8].mxu0 %v813_v51  ;;  %957 = vmatmul.mubr.f32.vlgmr.msra.gmra.mrb[8].mxu1 %v813_v51 }
 0x442   :  { %1868 = vmatpush1.bf16.msra.mxu0 %v2354_v10  ;;  %1900 = vmatpush1.bf16.msra.mxu1 %v2364_v20 }
 0x443   :  { %1870 = vmatprep.subr.bf16.mxu0 %v2356_v11  ;;  %1902 = vmatprep.subr.bf16.mxu1 %v2370_v28 }
 0x444   :  { %1056 = vmatprep.mubr.f32.mxu0 %v2272_v2  ;;  %1127 = vmatprep.mubr.f32.mxu1 %v2272_v2 }
 0x446   :  { %1872 = vmatpush1.bf16.msra.mxu0 %v2360_v18  ;;  %1904 = vmatpush1.bf16.msra.mxu1 %v2373_v32 }
 0x447   :  { %1874 = vmatprep.subr.bf16.mxu0 %v2367_v24  ;;  %1906 = vmatprep.subr.bf16.mxu1 %v2382_v41 }
 0x44a   :  { %1876 = vmatpush1.bf16.msra.mxu0 %v2376_v34  ;;  %1908 = vmatpush1.bf16.msra.mxu1 %v2385_v46 }
 0x44b   :  { %1878 = vmatprep.subr.bf16.mxu0 %v2380_v38  ;;  %1910 = vmatprep.subr.bf16.mxu1 %v2391_v50 }
 0x44e   :  { %1880 = vmatpush1.bf16.msra.mxu0 %v2388_v48  ;;  %1912 = vmatpush1.bf16.msra.mxu1 %v2397_v59 }
 0x44f   :  { %1882 = vmatprep.subr.bf16.mxu0 %v2394_v53  ;;  %1914 = vmatprep.subr.bf16.mxu1 %v2403_v62 }
 0x452   :  { %1884 = vmatpush1.bf16.msra.mxu0 %v2400_v60  ;;  %1916 = vmatpush1.bf16.msra.mxu1 %v2409_v13 }
 0x453   :  { %1886 = vmatprep.subr.bf16.mxu0 %v2406_v4  ;;  %1918 = vmatprep.subr.bf16.mxu1 %v2415_v16 }
 0x456   :  { %1888 = vmatpush1.bf16.msra.mxu0 %v2412_v14  ;;  %1920 = vmatpush1.bf16.msra.mxu1 %v2421_v30 }
 0x457   :  { %1890 = vmatprep.subr.bf16.mxu0 %v2418_v22  ;;  %1922 = vmatprep.subr.bf16.mxu1 %v2427_v35 }
 0x45a   :  { %1892 = vmatpush1.bf16.msra.mxu0 %v2424_v31  ;;  %1924 = vmatpush1.bf16.msra.mxu1 %v2433_v44 }
 0x45b   :  { %1894 = vmatprep.subr.bf16.mxu0 %v2430_v39  ;;  %1926 = vmatprep.subr.bf16.mxu1 %v2439_v47 }
 0x45e   :  { %1896 = vmatpush1.bf16.msra.mxu0 %v2436_v45  ;;  %1928 = vmatpush1.bf16.msra.mxu1 %v2443_v52 }
 0x45f   :  { %1930 = vmatprep.subr.bf16.mxu0 %v2352_v6  ;;  %1962 = vmatprep.subr.bf16.mxu1 %v2362_v19 }
 0x514   :  { %v887_v37 = vpop.f32.mrb[8].mxu0  ;;  %v958_v1 = vpop.f32.mrb[8].mxu1 }
 0x515   :  { %v963_v0 = vadd.f32 %v887_v37, %v817_v33  ;;  %v889_v54 = vpop.f32.mrb[9].mxu0  ;;  %v960_v55 = vpop.f32.mrb[9].mxu1  ;;  %v965_v63 = vadd.f32 %v958_v1, %v819_v56  ;;  %v989_v33 = vld [vmem:[#allocation6 + $0xa8] sm:$0xff] }
 0x516   :  { %v964_v57 = vadd.f32 %v889_v54, %v818_v36  ;;  %v966_v5 = vadd.f32 %v960_v55, %v820_v3  ;;  %v990_v55 = vld [vmem:[#allocation6 + $0xb0] sm:$0xff] }
 0x517   :  { %v967_v58 = vmul.f32 0.5, %v963_v0 }
 0x518   :  { %v971_v61 = vmul.f32 0.5, %v964_v57  ;;  %v976_v7 = vmul.f32 0.5, %v966_v5 }
 0x519   :  { %2107 = vtanh.f32 %v967_v58 }
 0x51a   :  { %2109 = vtanh.f32 %v971_v61 }
 0x51b   :  { %2111 = vtanh.f32 %v965_v63  ;;  %v991_v63 = vld [vmem:[#allocation6 + $0xb8] sm:$0xff] }
 0x51c   :  { %2113 = vtanh.f32 %v976_v7 }
 0x523   :  { %v2108_v8 = vpop.eup %2107 }
 0x524   :  { %v2110_v9 = vpop.eup %2109  ;;  %v969_v12 = vmul.f32 0.5, %v2108_v8 }
 0x525   :  { %v973_v15 = vmul.f32 0.5, %v2110_v9  ;;  %v2112_v21 = vpop.eup %2111 }
 0x526   :  { %v970_v17 = vadd.f32 0.5, %v969_v12  ;;  %v2114_v40 = vpop.eup %2113 }
 0x527   :  { %v974_v23 = vadd.f32 0.5, %v973_v15  ;;  %v978_v42 = vmul.f32 0.5, %v2114_v40 }
 0x528   :  { %v981_v25 = vmul.f32 %v2112_v21, %v970_v17 }
 0x529   :  { %v980_v26 = vmul.f32 %v974_v23, %v2601_v29  ;;  %v979_v43 = vadd.f32 0.5, %v978_v42  ;;  %v988_v29 = vld [vmem:[#allocation6 + $0xa0] sm:$0xff] }
 0x52b   :  { %v2639_v27 = vadd.f32 %v981_v25, %v980_v26 }
 0x52d   :  { %2115 = vtanh.f32 %v2639_v27 }
 0x537   :  { %v2116_v49 = vpop.eup %2115 }
 0x538   :  { %v984_v51 = vmul.f32 %v2116_v49, %v979_v43 }
 0x53a   :  { %986 = vst [vmem:[#allocation11 + $0x20] sm:$0xff] %v984_v51  ;;  %1057 = vmatmul.mubr.f32.vlgmr.msra.gmra.mrb[10].mxu0 %v984_v51  ;;  %1128 = vmatmul.mubr.f32.vlgmr.msra.gmra.mrb[10].mxu1 %v984_v51 }
 0x53b   :  { %1932 = vmatpush1.bf16.msra.mxu0 %v2354_v10  ;;  %1964 = vmatpush1.bf16.msra.mxu1 %v2364_v20 }
 0x53c   :  { %1934 = vmatprep.subr.bf16.mxu0 %v2356_v11  ;;  %1966 = vmatprep.subr.bf16.mxu1 %v2370_v28 }
 0x53d   :  { %1227 = vmatprep.mubr.f32.mxu0 %v2272_v2  ;;  %1298 = vmatprep.mubr.f32.mxu1 %v2272_v2 }
 0x53f   :  { %1936 = vmatpush1.bf16.msra.mxu0 %v2360_v18  ;;  %1968 = vmatpush1.bf16.msra.mxu1 %v2373_v32 }
 0x540   :  { %1938 = vmatprep.subr.bf16.mxu0 %v2367_v24  ;;  %1970 = vmatprep.subr.bf16.mxu1 %v2382_v41 }
 0x543   :  { %1940 = vmatpush1.bf16.msra.mxu0 %v2376_v34  ;;  %1972 = vmatpush1.bf16.msra.mxu1 %v2385_v46 }
 0x544   :  { %1942 = vmatprep.subr.bf16.mxu0 %v2380_v38  ;;  %1974 = vmatprep.subr.bf16.mxu1 %v2391_v50 }
 0x547   :  { %1944 = vmatpush1.bf16.msra.mxu0 %v2388_v48  ;;  %1976 = vmatpush1.bf16.msra.mxu1 %v2397_v59 }
 0x548   :  { %1946 = vmatprep.subr.bf16.mxu0 %v2394_v53  ;;  %1978 = vmatprep.subr.bf16.mxu1 %v2403_v62 }
 0x54b   :  { %1948 = vmatpush1.bf16.msra.mxu0 %v2400_v60  ;;  %1980 = vmatpush1.bf16.msra.mxu1 %v2409_v13 }
 0x54c   :  { %1950 = vmatprep.subr.bf16.mxu0 %v2406_v4  ;;  %1982 = vmatprep.subr.bf16.mxu1 %v2415_v16 }
 0x54f   :  { %1952 = vmatpush1.bf16.msra.mxu0 %v2412_v14  ;;  %1984 = vmatpush1.bf16.msra.mxu1 %v2421_v30 }
 0x550   :  { %1954 = vmatprep.subr.bf16.mxu0 %v2418_v22  ;;  %1986 = vmatprep.subr.bf16.mxu1 %v2427_v35 }
 0x553   :  { %1956 = vmatpush1.bf16.msra.mxu0 %v2424_v31  ;;  %1988 = vmatpush1.bf16.msra.mxu1 %v2433_v44 }
 0x554   :  { %1958 = vmatprep.subr.bf16.mxu0 %v2430_v39  ;;  %1990 = vmatprep.subr.bf16.mxu1 %v2439_v47 }
 0x557   :  { %1960 = vmatpush1.bf16.msra.mxu0 %v2436_v45  ;;  %1992 = vmatpush1.bf16.msra.mxu1 %v2443_v52 }
 0x558   :  { %1994 = vmatprep.subr.bf16.mxu0 %v2352_v6  ;;  %2026 = vmatprep.subr.bf16.mxu1 %v2362_v19 }
 0x60d   :  { %v1058_v36 = vpop.f32.mrb[10].mxu0  ;;  %v1129_v37 = vpop.f32.mrb[10].mxu1 }
 0x60e   :  { %v1134_v1 = vadd.f32 %v1058_v36, %v988_v29  ;;  %v1060_v0 = vpop.f32.mrb[11].mxu0  ;;  %v1131_v54 = vpop.f32.mrb[11].mxu1  ;;  %v1136_v61 = vadd.f32 %v1129_v37, %v990_v55  ;;  %v1332_v37 = vld [vmem:[#allocation6 + $0xf0] sm:$0xff] }
 0x60f   :  { %v1135_v56 = vadd.f32 %v1060_v0, %v989_v33  ;;  %v1137_v3 = vadd.f32 %v1131_v54, %v991_v63 }
 0x610   :  { %v1138_v57 = vmul.f32 0.5, %v1134_v1 }
 0x611   :  { %v1142_v58 = vmul.f32 0.5, %v1135_v56  ;;  %v1147_v6 = vmul.f32 0.5, %v1137_v3  ;;  %v1333_v56 = vld [vmem:[#allocation6 + $0xf8] sm:$0xff] }
 0x612   :  { %2117 = vtanh.f32 %v1138_v57 }
 0x613   :  { %2119 = vtanh.f32 %v1142_v58 }
 0x614   :  { %2121 = vtanh.f32 %v1136_v61 }
 0x615   :  { %2123 = vtanh.f32 %v1147_v6 }
 0x61c   :  { %v2118_v5 = vpop.eup %2117 }
 0x61d   :  { %v2120_v19 = vpop.eup %2119  ;;  %v1140_v7 = vmul.f32 0.5, %v2118_v5 }
 0x61e   :  { %v1144_v8 = vmul.f32 0.5, %v2120_v19  ;;  %v2122_v12 = vpop.eup %2121 }
 0x61f   :  { %v1141_v9 = vadd.f32 0.5, %v1140_v7  ;;  %v2124_v25 = vpop.eup %2123 }
 0x620   :  { %v1145_v15 = vadd.f32 0.5, %v1144_v8  ;;  %v1149_v26 = vmul.f32 0.5, %v2124_v25 }
 0x621   :  { %v1152_v17 = vmul.f32 %v2122_v12, %v1141_v9 }
 0x622   :  { %v1151_v21 = vmul.f32 %v1145_v15, %v2639_v27  ;;  %v1150_v40 = vadd.f32 0.5, %v1149_v26  ;;  %v1331_v27 = vld [vmem:[#allocation6 + $0xe8] sm:$0xff] }
 0x624   :  { %v2677_v23 = vadd.f32 %v1152_v17, %v1151_v21 }
 0x626   :  { %2125 = vtanh.f32 %v2677_v23 }
 0x630   :  { %v2126_v42 = vpop.eup %2125 }
 0x631   :  { %v1155_v43 = vmul.f32 %v2126_v42, %v1150_v40 }
 0x633   :  { %1157 = vst [vmem:[#allocation11 + $0x28] sm:$0xff] %v1155_v43  ;;  %1228 = vmatmul.mubr.f32.vlgmr.msra.gmra.mrb[12].mxu0 %v1155_v43  ;;  %1299 = vmatmul.mubr.f32.vlgmr.msra.gmra.mrb[12].mxu1 %v1155_v43 }
 0x634   :  { %1996 = vmatpush1.bf16.msra.mxu0 %v2354_v10  ;;  %2028 = vmatpush1.bf16.msra.mxu1 %v2364_v20  ;;  %v1160_v10 = vld [vmem:[#allocation6 + $0xc8] sm:$0xff] }
 0x635   :  { %1998 = vmatprep.subr.bf16.mxu0 %v2356_v11  ;;  %2030 = vmatprep.subr.bf16.mxu1 %v2370_v28 }
 0x636   :  { %1398 = vmatprep.mubr.f32.mxu0 %v2272_v2  ;;  %1469 = vmatprep.mubr.f32.mxu1 %v2272_v2  ;;  %v1159_v2 = vld [vmem:[#allocation6 + $0xc0] sm:$0xff] }
 0x638   :  { %2000 = vmatpush1.bf16.msra.mxu0 %v2360_v18  ;;  %2032 = vmatpush1.bf16.msra.mxu1 %v2373_v32  ;;  %v1161_v32 = vld [vmem:[#allocation6 + $0xd0] sm:$0xff] }
 0x639   :  { %2002 = vmatprep.subr.bf16.mxu0 %v2367_v24  ;;  %2034 = vmatprep.subr.bf16.mxu1 %v2382_v41 }
 0x63c   :  { %2004 = vmatpush1.bf16.msra.mxu0 %v2376_v34  ;;  %2036 = vmatpush1.bf16.msra.mxu1 %v2385_v46 }
 0x63d   :  { %2006 = vmatprep.subr.bf16.mxu0 %v2380_v38  ;;  %2038 = vmatprep.subr.bf16.mxu1 %v2391_v50 }
 0x640   :  { %2008 = vmatpush1.bf16.msra.mxu0 %v2388_v48  ;;  %2040 = vmatpush1.bf16.msra.mxu1 %v2397_v59  ;;  %v1162_v48 = vld [vmem:[#allocation6 + $0xd8] sm:$0xff] }
 0x641   :  { %2010 = vmatprep.subr.bf16.mxu0 %v2394_v53  ;;  %2042 = vmatprep.subr.bf16.mxu1 %v2403_v62 }
 0x644   :  { %2012 = vmatpush1.bf16.msra.mxu0 %v2400_v60  ;;  %2044 = vmatpush1.bf16.msra.mxu1 %v2409_v13 }
 0x645   :  { %2014 = vmatprep.subr.bf16.mxu0 %v2406_v4  ;;  %2046 = vmatprep.subr.bf16.mxu1 %v2415_v16 }
 0x648   :  { %2016 = vmatpush1.bf16.msra.mxu0 %v2412_v14  ;;  %2048 = vmatpush1.bf16.msra.mxu1 %v2421_v30 }
 0x649   :  { %2018 = vmatprep.subr.bf16.mxu0 %v2418_v22  ;;  %2050 = vmatprep.subr.bf16.mxu1 %v2427_v35 }
 0x64c   :  { %2020 = vmatpush1.bf16.msra.mxu0 %v2424_v31  ;;  %2052 = vmatpush1.bf16.msra.mxu1 %v2433_v44 }
 0x64d   :  { %2022 = vmatprep.subr.bf16.mxu0 %v2430_v39  ;;  %2054 = vmatprep.subr.bf16.mxu1 %v2439_v47 }
 0x650   :  { %2024 = vmatpush1.bf16.msra.mxu0 %v2436_v45  ;;  %2056 = vmatpush1.bf16.msra.mxu1 %v2443_v52  ;;  %v1330_v52 = vld [vmem:[#allocation6 + $0xe0] sm:$0xff] }
 0x706   :  { %v1229_v11 = vpop.f32.mrb[12].mxu0  ;;  %v1300_v18 = vpop.f32.mrb[12].mxu1 }
 0x707   :  { %v1305_v20 = vadd.f32 %v1229_v11, %v1159_v2  ;;  %v1231_v24 = vpop.f32.mrb[13].mxu0  ;;  %v1302_v28 = vpop.f32.mrb[13].mxu1  ;;  %v1307_v46 = vadd.f32 %v1300_v18, %v1161_v32 }
 0x708   :  { %v1306_v34 = vadd.f32 %v1231_v24, %v1160_v10  ;;  %v1308_v50 = vadd.f32 %v1302_v28, %v1162_v48 }
 0x709   :  { %v1309_v38 = vmul.f32 0.5, %v1305_v20 }
 0x70a   :  { %v1313_v41 = vmul.f32 0.5, %v1306_v34  ;;  %v1318_v53 = vmul.f32 0.5, %v1308_v50 }
 0x70b   :  { %2127 = vtanh.f32 %v1309_v38 }
 0x70c   :  { %2129 = vtanh.f32 %v1313_v41 }
 0x70d   :  { %2131 = vtanh.f32 %v1307_v46 }
 0x70e   :  { %2133 = vtanh.f32 %v1318_v53 }
 0x715   :  { %v2128_v59 = vpop.eup %2127 }
 0x716   :  { %v2130_v60 = vpop.eup %2129  ;;  %v1311_v62 = vmul.f32 0.5, %v2128_v59 }
 0x717   :  { %v1315_v4 = vmul.f32 0.5, %v2130_v60  ;;  %v2132_v14 = vpop.eup %2131 }
 0x718   :  { %v1312_v13 = vadd.f32 0.5, %v1311_v62  ;;  %v2134_v35 = vpop.eup %2133 }
 0x719   :  { %v1316_v16 = vadd.f32 0.5, %v1315_v4  ;;  %v1320_v39 = vmul.f32 0.5, %v2134_v35 }
 0x71a   :  { %v1323_v22 = vmul.f32 %v2132_v14, %v1312_v13 }
 0x71b   :  { %v1322_v30 = vmul.f32 %v1316_v16, %v2677_v23  ;;  %v1321_v44 = vadd.f32 0.5, %v1320_v39 }
 0x71d   :  { %v1324_v31 = vadd.f32 %v1323_v22, %v1322_v30 }
 0x71f   :  { %2135 = vtanh.f32 %v1324_v31 }
 0x729   :  { %v2136_v45 = vpop.eup %2135 }
 0x72a   :  { %v1326_v47 = vmul.f32 %v2136_v45, %v1321_v44 }
 0x72c   :  { %1328 = vst [vmem:[#allocation11 + $0x30] sm:$0xff] %v1326_v47  ;;  %1399 = vmatmul.mubr.f32.vlgmr.msra.gmra.mrb[14].mxu0 %v1326_v47  ;;  %1470 = vmatmul.mubr.f32.vlgmr.msra.gmra.mrb[14].mxu1 %v1326_v47 }
 0x7ff   :  { %v1400_v49 = vpop.f32.mrb[14].mxu0  ;;  %v1471_v51 = vpop.f32.mrb[14].mxu1 }
 0x800   :  { %v1476_v29 = vadd.f32 %v1400_v49, %v1330_v52  ;;  %v1402_v33 = vpop.f32.mrb[15].mxu0  ;;  %v1473_v36 = vpop.f32.mrb[15].mxu1  ;;  %v1478_v55 = vadd.f32 %v1471_v51, %v1332_v37 }
 0x801   :  { %v1477_v1 = vadd.f32 %v1402_v33, %v1331_v27  ;;  %v1479_v57 = vadd.f32 %v1473_v36, %v1333_v56 }
 0x802   :  { %v1480_v0 = vmul.f32 0.5, %v1476_v29 }
 0x803   :  { %v1484_v54 = vmul.f32 0.5, %v1477_v1  ;;  %v1489_v58 = vmul.f32 0.5, %v1479_v57 }
 0x804   :  { %2137 = vtanh.f32 %v1480_v0 }
 0x805   :  { %2139 = vtanh.f32 %v1484_v54 }
 0x806   :  { %2141 = vtanh.f32 %v1478_v55 }
 0x807   :  { %2143 = vtanh.f32 %v1489_v58 }
 0x80e   :  { %v2138_v61 = vpop.eup %2137 }
 0x80f   :  { %v2140_v63 = vpop.eup %2139  ;;  %v1482_v3 = vmul.f32 0.5, %v2138_v61 }
 0x810   :  { %v1486_v6 = vmul.f32 0.5, %v2140_v63  ;;  %v2142_v19 = vpop.eup %2141 }
 0x811   :  { %v1483_v5 = vadd.f32 0.5, %v1482_v3 }
 0x812   :  { %v1487_v7 = vadd.f32 0.5, %v1486_v6 }
 0x813   :  { %v1494_v8 = vmul.f32 %v2142_v19, %v1483_v5 }
 0x814   :  { %v1493_v9 = vmul.f32 %v1487_v7, %v1324_v31 }
 0x816   :  { %v1495_v12 = vadd.f32 %v1494_v8, %v1493_v9 }
 0x818   :  { %2145 = vtanh.f32 %v1495_v12  ;;  %1505 = vst [vmem:[#allocation12] sm:$0xff] %v1495_v12 }
 0x819   :  { %2224 = shalt.err (!%p2221_p0)
}
 0x81a   :  { %s2225_s9 = scalar_lea.hbm %s2742_s5, 128 }
 0x81b   :  { %p2226_p1 = scmp.ne.s32.totalorder %s2742_s5, %s2225_s9  ;;  %p2229_p2 = scmp.lt.u32.totalorder %s2225_s9, %s2742_s5 }
 0x81d   :  { %p2231_p3 = pnand %p2229_p2, %p2226_p1 }
 0x81f   :  { %2234 = shalt.err (!%p2231_p3)
}
 0x820   :  { %1527 = dma.vmem_to_hbm [thread:$0]  %s1525_s3, 128, %s2742_s5, [#allocation13]   ;;  %v2144_v15 = vpop.eup %2143 }
 0x821   :  { %v1491_v17 = vmul.f32 0.5, %v2144_v15  ;;  %s2274_s16 = smov [#allocation11]  }
 0x822   :  { %s1511_s0 = sshll.u32 %s2274_s16, 4  ;;  %v2146_v23 = vpop.eup %2145  ;;  %s1512_s0 = int_to_ptr.vmem [resolvable:$true] %s1511_s0 }
 0x823   :  { %v1492_v21 = vadd.f32 0.5, %v1491_v17  ;;  %s2235_s17 = scalar_lea.vmem %s1512_s0, 1024  ;;  %p2240_p5 = scmp.lt.s32.totalorder %s1512_s0, %s1512_s0 }
 0x824   :  { %p2236_p4 = scmp.ne.s32.totalorder %s1512_s0, %s2235_s17  ;;  %p2241_p6 = scmp.lt.s32.totalorder %s2235_s17, %s2235_s17 }
 0x825   :  { %v1497_v25 = vmul.f32 %v2146_v23, %v1492_v21 }
 0x826   :  { %p2242_p7 = por %p2241_p6, %p2240_p5 }
 0x827   :  { %1499 = vst [vmem:[#allocation11 + $0x38] sm:$0xff] %v1497_v25 }
 0x828   :  { %p2243_p8 = pnand %p2242_p7, %p2236_p4 }
 0x82a   :  { %2246 = shalt.err (!%p2243_p8)
}
 0x82b   :  { %s2247_s5 = scalar_lea.hbm %s2741_s4, 1024 }
 0x82c   :  { %p2248_p9 = scmp.ne.s32.totalorder %s2741_s4, %s2247_s5  ;;  %p2251_p10 = scmp.lt.u32.totalorder %s2247_s5, %s2741_s4 }
 0x82e   :  { %p2253_p11 = pnand %p2251_p10, %p2248_p9 }
 0x830   :  { %2256 = shalt.err (!%p2253_p11)
}
 0x831   :  { %s2275_s24 = smov 128   ;;  %s2276_s25 = smov 8  }
 0x832   :  { %1517 = dma.vmem_to_hbm [thread:$0]  %s1512_s0, 1024, %s2741_s4, [#allocation8], %s2275_s24, %s2275_s24, %s2276_s25  }
 0x833   :  { %2263 = dma.done.wait [#allocation8], 1024  }
 0x834   :  { %2264 = vsyncadd [#allocation8], 4294966272 }
 0x835   :  { %2265 = dma.done.wait [#allocation13], 128  }
 0x836   :  { %2266 = vsyncadd [#allocation13], 4294967168 }
 0x837   :  { %1534 = vsyncpa [#allocation7], 1 }
 0x838   :  { %1535 = vsyncpa [#allocation10], 1 }
 0x839   :  { %1536 = vsyncpa [#allocation8], 1 }
 0x83a   :  { %1537 = vsyncpa [#allocation13], 1 }
 0x83b   :  { %1538 = vsyncmov [#allocation5] }
 0x83e   :  { %s1539_s27 = vpop.sfrf %1538 }
 0x83f   :  { %p1544_p12 = scmp.ne.s32.totalorder %s1539_s27, 0 }
 0x841   :  { %1543 = shalt.err (%p1544_p12)  }

</bundles_post_ra>
